<compile_context>
chip_gen: v7x
topology: tpu7x:2x2x1
jax: 0.10.0
libtpu: 0.0.40
codegen_flags: <defaults>
</compile_context>

<pallas_src>
import functools

import numpy as np
import jax
import jax.numpy as jnp
from jax.experimental import pallas as pl
from jax.experimental.pallas import tpu as pltpu

VMEM_SPEC = pl.BlockSpec(memory_space=pltpu.MemorySpace.VMEM)


# ----------------------------------------------------------------------------
# Host-side folding helpers
# ----------------------------------------------------------------------------

def _conv_to_band(w, dil, L):
    """Causal dilated Conv1d weight (K, Cin, Cout) -> dense (L*Cin, L*Cout) operator
    acting on the flat l*C+c layout (left zero padding = causal)."""
    w = np.asarray(w, np.float32)
    K, Cin, Cout = w.shape
    T = np.zeros((L * Cin, L * Cout), np.float32)
    for k in range(K):
        shift = (K - 1 - k) * dil
        for t in range(L):
            s = t - shift
            if s >= 0:
                T[s * Cin:(s + 1) * Cin, t * Cout:(t + 1) * Cout] = w[k]
    return T


def _blockdiag(a, b):
    a = np.asarray(a, np.float32)
    b = np.asarray(b, np.float32)
    out = np.zeros((a.shape[0] + b.shape[0], a.shape[1] + b.shape[1]), np.float32)
    out[:a.shape[0], :a.shape[1]] = a
    out[a.shape[0]:, a.shape[1]:] = b
    return out


def _pad8(n):
    return -(-n // 8) * 8


def _pad128(n):
    return max(128, -(-n // 128) * 128)


class _Packer:
    """Packs many small f32 matrices into a few lane-width-grouped VMEM buffers.

    Each matrix occupies an 8-row-aligned row block [off, off+rows) in the buffer of
    its padded-to-128 width; the kernel slices it back out with static bounds."""

    def __init__(self):
        self._groups = {}     # padded width -> list of np arrays (insertion order)
        self._rows = {}       # padded width -> running 8-aligned row offset
        self.slots = {}       # name -> (padded_width, row_off, rows, cols)

    def add(self, name, arr):
        arr = np.asarray(arr, np.float32)
        r, c = arr.shape
        w = _pad128(c)
        off = self._rows.get(w, 0)
        self._groups.setdefault(w, []).append(arr)
        self._rows[w] = off + _pad8(r)
        self.slots[name] = (w, off, r, c)

    def finalize(self):
        widths = tuple(sorted(self._groups, reverse=True))
        bufs = []
        for w in widths:
            buf = np.zeros((self._rows[w], w), np.float32)
            off = 0
            for arr in self._groups[w]:
                r, c = arr.shape
                buf[off:off + r, :c] = arr
                off += _pad8(r)
            bufs.append(jnp.asarray(buf))
        return widths, bufs


def prepare_params(params, cfg1, cfg2, dilations):
    """Fold raw (PyTorch-shaped) params into packed buffers + a static slicing plan."""
    L1, L2 = cfg1["num_timesteps"], cfg2["num_timesteps"]
    ch1 = [cfg1["num_inputs"]] + list(cfg1["num_channels"])
    ch2 = [cfg2["num_inputs"]] + list(cfg2["num_channels"])
    nlayers = len(dilations)

    packer = _Packer()
    bias_vecs = []
    bias_index = {}

    def add_bias(name, vec):
        vec = np.asarray(vec, np.float32).reshape(-1)
        bias_index[name] = (len(bias_vecs), int(vec.shape[0]))
        bias_vecs.append(vec)

    has_ds, douts = [], []
    for i in range(nlayers):
        p1, p2 = params["tcn1"][i], params["tcn2"][i]
        dil = dilations[i]
        # Block-diagonal two-stream conv operators (fills the 256-wide MXU).
        T1 = _blockdiag(_conv_to_band(p1["w1"], dil, L1), _conv_to_band(p2["w1"], dil, L2))
        T2 = _blockdiag(_conv_to_band(p1["w2"], dil, L1), _conv_to_band(p2["w2"], dil, L2))
        dout = L1 * ch1[i + 1] + L2 * ch2[i + 1]
        douts.append(dout)

        layer_ds = ("wd" in p1) or ("wd" in p2)
        has_ds.append(layer_ds)
        if layer_ds:
            def ds_block(p, L, cin, cout):
                if "wd" in p:   # 1x1 downsample -> block-diagonal operator
                    wd = np.asarray(p["wd"], np.float32)[0]            # (cin, cout)
                    return (np.kron(np.eye(L, dtype=np.float32), wd),
                            np.tile(np.asarray(p["bd"], np.float32), L))
                return np.eye(L * cin, dtype=np.float32), np.zeros(L * cout, np.float32)
            Dc, bdc = ds_block(p1, L1, ch1[i], ch1[i + 1])
            Dv, bdv = ds_block(p2, L2, ch2[i], ch2[i + 1])
            # conv1 and downsample share the same LHS -> fuse RHS as [W1 | D].
            packer.add(f"conv1ds_{i}", np.concatenate([T1, _blockdiag(Dc, Dv)], axis=1))
            add_bias(f"bd_{i}", np.concatenate([bdc, bdv]))
        else:
            packer.add(f"conv1_{i}", T1)
        packer.add(f"w2_{i}", T2)
        add_bias(f"b1_{i}", np.concatenate([np.tile(np.asarray(p1["b1"], np.float32), L1),
                                            np.tile(np.asarray(p2["b1"], np.float32), L2)]))
        add_bias(f"b2_{i}", np.concatenate([np.tile(np.asarray(p1["b2"], np.float32), L1),
                                            np.tile(np.asarray(p2["b2"], np.float32), L2)]))

        # MMTM: mean-over-time squeeze folded into fc_squeeze (mean is linear),
        # both gate FCs fused, gate expansion as a blockdiag selector.
        m = params["mmtm"][i]
        wsq_full = np.concatenate(
            [np.tile(np.asarray(m["wsq_c"], np.float32), (L1, 1)) / L1,
             np.tile(np.asarray(m["wsq_v"], np.float32), (L2, 1)) / L2], axis=0)
        packer.add(f"wsq_{i}", wsq_full)
        add_bias(f"bsq_{i}", m["bsq"])
        packer.add(f"wg_{i}", np.concatenate([np.asarray(m["wvis"], np.float32),
                                              np.asarray(m["wsk"], np.float32)], axis=1))
        add_bias(f"bg_{i}", np.concatenate([np.asarray(m["bvis"], np.float32),
                                            np.asarray(m["bsk"], np.float32)]))
        c1, c2 = ch1[i + 1], ch2[i + 1]
        packer.add(f"expand_{i}", _blockdiag(np.tile(np.eye(c1, dtype=np.float32), (1, L1)),
                                             np.tile(np.eye(c2, dtype=np.float32), (1, L2))))

    # Head: both linear layers fused into one RHS [Wa | Wc] against the stacked
    # activation (which already equals the flatten+concat of the PyTorch reference).
    h = params["head"]
    wa = np.asarray(h["wa"], np.float32)
    wc = np.asarray(h["wc"], np.float32)
    na, nc = int(wa.shape[1]), int(wc.shape[1])
    packer.add("head_w", np.concatenate([wa, wc], axis=1))
    add_bias("head_b", np.concatenate([np.asarray(h["ba"], np.float32),
                                       np.asarray(h["bc"], np.float32)]))
    add_bias("head_g", np.concatenate([np.asarray(h["ga"], np.float32),
                                       np.asarray(h["gc"], np.float32)]))
    add_bias("head_bt", np.concatenate([np.asarray(h["bta"], np.float32),
                                        np.asarray(h["btc"], np.float32)]))

    widths, wbufs = packer.finalize()
    bw = _pad128(max(v.shape[0] for v in bias_vecs))
    bias_buf = np.zeros((_pad8(len(bias_vecs)), bw), np.float32)
    for r, vec in enumerate(bias_vecs):
        bias_buf[r, :vec.shape[0]] = vec

    plan = dict(nlayers=nlayers, has_ds=tuple(has_ds), douts=tuple(douts),
                d0c=L1 * ch1[0], widths=widths, slots=packer.slots,
                bias_index=bias_index, num_outputs=(na, nc))
    return jnp.asarray(bias_buf), wbufs, plan


# ----------------------------------------------------------------------------
# The single fused kernel
# ----------------------------------------------------------------------------

def _make_dnfusion_kernel(plan):
    widths = plan["widths"]
    slots = plan["slots"]
    bidx = plan["bias_index"]
    nlayers = plan["nlayers"]
    has_ds = plan["has_ds"]
    douts = plan["douts"]
    d0c = plan["d0c"]
    na, nc = plan["num_outputs"]

    def kernel(c_ref, v_ref, bias_ref, *rest):
        wrefs = dict(zip(widths, rest[:len(widths)]))
        out_ref = rest[len(widths)]

        def W(name, r0=None, r1=None):
            w, off, r, c = slots[name]
            lo = off + (0 if r0 is None else r0)
            hi = off + (r if r1 is None else r1)
            return wrefs[w][lo:hi, :c]

        def bias(name):
            row, n = bidx[name]
            return bias_ref[row:row + 1, :n]            # (1, n)

        def dot(a, b):
            return jnp.dot(a, b, preferred_element_type=jnp.float32)

        def sigmoid(z):                                  # tanh -> EUP slot
            return 0.5 * jnp.tanh(0.5 * z) + 0.5

        x = None
        for i in range(nlayers):
            dout = douts[i]
            op_name = f"conv1ds_{i}" if has_ds[i] else f"conv1_{i}"
            if i == 0:
                # First layer consumes the two flat input refs directly
                # (two partial dots == one stacked dot; avoids an in-kernel concat).
                pre = (dot(c_ref[...], W(op_name, 0, d0c))
                       + dot(v_ref[...], W(op_name, d0c, None)))
            else:
                pre = dot(x, W(op_name))
            if has_ds[i]:
                h = jnp.maximum(pre[:, :dout] + bias(f"b1_{i}"), 0.0)
                res = pre[:, dout:2 * dout] + bias(f"bd_{i}")
            else:
                h = jnp.maximum(pre + bias(f"b1_{i}"), 0.0)
                res = x if i > 0 else jnp.concatenate([c_ref[...], v_ref[...]], axis=1)
            o = jnp.maximum(dot(h, W(f"w2_{i}")) + bias(f"b2_{i}"), 0.0)
            x = jnp.maximum(o + res, 0.0)

            # MMTM (warmup branch): folded squeeze, fused gate FCs, blockdiag expand.
            ex = jnp.maximum(dot(x, W(f"wsq_{i}")) + bias(f"bsq_{i}"), 0.0)
            g = sigmoid(dot(ex, W(f"wg_{i}")) + bias(f"bg_{i}"))
            x = x * dot(g, W(f"expand_{i}"))

        # Heads: one fused dot, then per-branch LayerNorm + Softmax, one output store.
        z = dot(x, W("head_w")) + bias("head_b")
        gam = bias("head_g")
        bet = bias("head_bt")

        def ln_softmax(zz, g, b):
            mu = jnp.mean(zz, axis=-1, keepdims=True)
            var = jnp.mean((zz - mu) ** 2, axis=-1, keepdims=True)
            zn = (zz - mu) * jax.lax.rsqrt(var + 1e-5) * g + b
            zm = jnp.max(zn, axis=-1, keepdims=True)
            e = jnp.exp(zn - zm)
            s = jnp.sum(e, axis=-1, keepdims=True)
            return e * pl.reciprocal(s, approx=True)     # EUP rcp instead of VPU divide

        avpu = ln_softmax(z[:, :na], gam[:, :na], bet[:, :na])
        crt = ln_softmax(z[:, na:na + nc], gam[:, na:na + nc], bet[:, na:na + nc])
        out_ref[...] = jnp.concatenate([avpu, crt], axis=1)

    return kernel


def dnfusion_forward(clinical, vital, bias_buf, wbufs, *, plan):
    """clinical: (B, L1, Cin1) NLC; vital: (B, L2, Cin2) NLC."""
    B = clinical.shape[0]
    # Trailing-dim collapse is a metadata-only reshape (flat index = l*C + c).
    cflat = clinical.reshape(B, -1)
    vflat = vital.reshape(B, -1)
    na, nc = plan["num_outputs"]
    out = pl.pallas_call(
        _make_dnfusion_kernel(plan),
        out_shape=jax.ShapeDtypeStruct((B, na + nc), jnp.float32),
        in_specs=[VMEM_SPEC] * (3 + len(wbufs)),
        out_specs=VMEM_SPEC,
    )(cflat, vflat, bias_buf, *wbufs)
    return out[:, :na], out[:, na:]


# ----------------------------------------------------------------------------
# Deterministic parameter construction (shapes from DNFusion.__init__)
# ----------------------------------------------------------------------------

def _xavier(key, shape, gain=1.0):
    fan_in, fan_out = shape[0], shape[1]
    bound = gain * jnp.sqrt(6.0 / (fan_in + fan_out))
    return jax.random.uniform(key, shape, jnp.float32, -bound, bound)


def _conv_w(key, K, cin, cout):
    bound = jnp.sqrt(1.0 / (cin * K))
    return jax.random.uniform(key, (K, cin, cout), jnp.float32, -bound, bound)


def init_params(key, cfg1, cfg2, num_outputs=(4, 7), mmtm_ratio=1):
    K = cfg1["kernel_size"]
    nlayers = len(cfg1["num_channels"])
    params = {"tcn1": [], "tcn2": [], "mmtm": [], "head": {}}
    keys = iter(jax.random.split(key, 8 * nlayers * 3 + 16))

    def tcn_layer_params(cin, cout):
        p = {
            "w1": _conv_w(next(keys), K, cin, cout),
            "b1": 0.01 * jnp.ones((cout,), jnp.float32),
            "w2": _conv_w(next(keys), K, cout, cout),
            "b2": 0.01 * jnp.ones((cout,), jnp.float32),
        }
        if cin != cout:
            p["wd"] = _conv_w(next(keys), 1, cin, cout)
            p["bd"] = jnp.zeros((cout,), jnp.float32)
        return p

    ch1 = [cfg1["num_inputs"]] + list(cfg1["num_channels"])
    ch2 = [cfg2["num_inputs"]] + list(cfg2["num_channels"])
    for i in range(nlayers):
        params["tcn1"].append(tcn_layer_params(ch1[i], ch1[i + 1]))
        params["tcn2"].append(tcn_layer_params(ch2[i], ch2[i + 1]))
        c1, c2 = cfg1["num_channels"][i], cfg2["num_channels"][i]
        dim = c1 + c2
        dim_out = int(2 * dim / mmtm_ratio)
        wsq = _xavier(next(keys), (dim, dim_out))
        params["mmtm"].append({
            "wsq_c": wsq[:c1], "wsq_v": wsq[c1:],
            "bsq": jnp.zeros((dim_out,), jnp.float32),
            "wvis": _xavier(next(keys), (dim_out, c1)),
            "bvis": jnp.zeros((c1,), jnp.float32),
            "wsk": _xavier(next(keys), (dim_out, c2)),
            "bsk": jnp.zeros((c2,), jnp.float32),
        })

    d_tot = (cfg1["num_channels"][-1] * cfg1["num_timesteps"]
             + cfg2["num_channels"][-1] * cfg2["num_timesteps"])
    na, nc = num_outputs
    params["head"] = {
        "wa": _xavier(next(keys), (d_tot, na), gain=1.0),   # xavier, sigmoid gain = 1
        "ba": 0.01 * jnp.ones((na,), jnp.float32),
        "ga": jnp.ones((na,), jnp.float32),                 # LayerNorm weight
        "bta": jnp.zeros((na,), jnp.float32),               # LayerNorm bias
        "wc": _xavier(next(keys), (d_tot, nc), gain=1.0),
        "bc": 0.01 * jnp.ones((nc,), jnp.float32),
        "gc": jnp.ones((nc,), jnp.float32),
        "btc": jnp.zeros((nc,), jnp.float32),
    }
    return params


if __name__ == "__main__":
    cfg1 = dict(num_inputs=6, num_timesteps=16, num_channels=[8, 8],
                kernel_size=3, dilations=[1, 2])
    cfg2 = dict(num_inputs=4, num_timesteps=16, num_channels=[8, 8],
                kernel_size=3, dilations=[1, 2])
    B = 2

    root = jax.random.PRNGKey(0)
    kp, kc, kv = jax.random.split(root, 3)
    params = init_params(kp, cfg1, cfg2, num_outputs=(4, 7), mmtm_ratio=1)
    bias_buf, wbufs, plan = prepare_params(params, cfg1, cfg2, tuple(cfg1["dilations"]))

    clinical = jax.random.normal(kc, (B, cfg1["num_timesteps"], cfg1["num_inputs"]),
                                 jnp.float32)
    vital = jax.random.normal(kv, (B, cfg2["num_timesteps"], cfg2["num_inputs"]),
                              jnp.float32)

    fwd = jax.jit(functools.partial(dnfusion_forward, plan=plan))
    avpu, crt = fwd(clinical, vital, bias_buf, wbufs)
    jax.block_until_ready((avpu, crt))

    assert avpu.shape == (B, 4) and crt.shape == (B, 7)
    assert bool(jnp.all(jnp.isfinite(avpu))) and bool(jnp.all(jnp.isfinite(crt)))
    assert jnp.allclose(jnp.sum(avpu, axis=-1), 1.0, atol=5e-3)
    assert jnp.allclose(jnp.sum(crt, axis=-1), 1.0, atol=5e-3)
    print("KERNEL_OK")
</pallas_src>

<mosaic_0001>
module attributes {stable_mosaic.version = 11 : i64} {
  func.func @kernel(%arg0: memref<2x96xf32, #tpu.memory_space<vmem>>, %arg1: memref<2x64xf32, #tpu.memory_space<vmem>>, %arg2: memref<16x256xf32, #tpu.memory_space<vmem>>, %arg3: memref<160x512xf32, #tpu.memory_space<vmem>>, %arg4: memref<800x256xf32, #tpu.memory_space<vmem>>, %arg5: memref<832x128xf32, #tpu.memory_space<vmem>>, %arg6: memref<2x11xf32, #tpu.memory_space<vmem>>) attributes {dimension_semantics = [], scalar_prefetch = 0 : i64, scratch_operands = 0 : i64, tpu.core_type = #tpu.core_type<tc>} {
    %c0 = arith.constant 0 : index
    %c0_0 = arith.constant 0 : index
    %0 = vector.load %arg0[%c0, %c0_0] : memref<2x96xf32, #tpu.memory_space<vmem>>, vector<2x96xf32>
    %c0_1 = arith.constant 0 : index
    %c0_2 = arith.constant 0 : index
    %1 = vector.load %arg3[%c0_1, %c0_2] : memref<160x512xf32, #tpu.memory_space<vmem>>, vector<96x512xf32>
    %cst = arith.constant dense<0.000000e+00> : vector<2x512xf32>
    %2 = tpu.matmul %0, %1, %cst {dimension_numbers = #tpu.dot_dimension_numbers<[1], [0], [0], [1], [0, 0, 1, 1], [], []>} : vector<2x96xf32>, vector<96x512xf32>, vector<2x512xf32> -> vector<2x512xf32>
    %c0_3 = arith.constant 0 : index
    %c0_4 = arith.constant 0 : index
    %3 = vector.load %arg1[%c0_3, %c0_4] : memref<2x64xf32, #tpu.memory_space<vmem>>, vector<2x64xf32>
    %c96 = arith.constant 96 : index
    %c0_5 = arith.constant 0 : index
    %4 = vector.load %arg3[%c96, %c0_5] : memref<160x512xf32, #tpu.memory_space<vmem>>, vector<64x512xf32>
    %cst_6 = arith.constant dense<0.000000e+00> : vector<2x512xf32>
    %5 = tpu.matmul %3, %4, %cst_6 {dimension_numbers = #tpu.dot_dimension_numbers<[1], [0], [0], [1], [0, 0, 1, 1], [], []>} : vector<2x64xf32>, vector<64x512xf32>, vector<2x512xf32> -> vector<2x512xf32>
    %6 = arith.addf %2, %5 : vector<2x512xf32>
    %7 = vector.extract_strided_slice %6 {offsets = [0, 0], sizes = [2, 256], strides = [1, 1]} : vector<2x512xf32> to vector<2x256xf32>
    %c1 = arith.constant 1 : index
    %c0_7 = arith.constant 0 : index
    %8 = vector.load %arg2[%c1, %c0_7] : memref<16x256xf32, #tpu.memory_space<vmem>>, vector<1x256xf32>
    %9 = vector.broadcast %8 : vector<1x256xf32> to vector<2x256xf32>
    %10 = arith.addf %7, %9 : vector<2x256xf32>
    %cst_8 = arith.constant 0.000000e+00 : f32
    %11 = vector.broadcast %cst_8 : f32 to vector<2x256xf32>
    %12 = arith.maximumf %10, %11 : vector<2x256xf32>
    %13 = vector.extract_strided_slice %6 {offsets = [0, 256], sizes = [2, 256], strides = [1, 1]} : vector<2x512xf32> to vector<2x256xf32>
    %c0_9 = arith.constant 0 : index
    %c0_10 = arith.constant 0 : index
    %14 = vector.load %arg2[%c0_9, %c0_10] : memref<16x256xf32, #tpu.memory_space<vmem>>, vector<1x256xf32>
    %15 = vector.broadcast %14 : vector<1x256xf32> to vector<2x256xf32>
    %16 = arith.addf %13, %15 : vector<2x256xf32>
    %c0_11 = arith.constant 0 : index
    %c0_12 = arith.constant 0 : index
    %17 = vector.load %arg4[%c0_11, %c0_12] : memref<800x256xf32, #tpu.memory_space<vmem>>, vector<256x256xf32>
    %cst_13 = arith.constant dense<0.000000e+00> : vector<2x256xf32>
    %18 = tpu.matmul %12, %17, %cst_13 {dimension_numbers = #tpu.dot_dimension_numbers<[1], [0], [0], [1], [0, 0, 1, 1], [], []>} : vector<2x256xf32>, vector<256x256xf32>, vector<2x256xf32> -> vector<2x256xf32>
    %c2 = arith.constant 2 : index
    %c0_14 = arith.constant 0 : index
    %19 = vector.load %arg2[%c2, %c0_14] : memref<16x256xf32, #tpu.memory_space<vmem>>, vector<1x256xf32>
    %20 = vector.broadcast %19 : vector<1x256xf32> to vector<2x256xf32>
    %21 = arith.addf %18, %20 : vector<2x256xf32>
    %cst_15 = arith.constant 0.000000e+00 : f32
    %22 = vector.broadcast %cst_15 : f32 to vector<2x256xf32>
    %23 = arith.maximumf %21, %22 : vector<2x256xf32>
    %24 = arith.addf %23, %16 : vector<2x256xf32>
    %cst_16 = arith.constant 0.000000e+00 : f32
    %25 = vector.broadcast %cst_16 : f32 to vector<2x256xf32>
    %26 = arith.maximumf %24, %25 : vector<2x256xf32>
    %c0_17 = arith.constant 0 : index
    %c0_18 = arith.constant 0 : index
    %27 = vector.load %arg5[%c0_17, %c0_18] : memref<832x128xf32, #tpu.memory_space<vmem>>, vector<256x32xf32>
    %cst_19 = arith.constant dense<0.000000e+00> : vector<2x32xf32>
    %28 = tpu.matmul %26, %27, %cst_19 {dimension_numbers = #tpu.dot_dimension_numbers<[1], [0], [0], [1], [0, 0, 1, 1], [], []>} : vector<2x256xf32>, vector<256x32xf32>, vector<2x32xf32> -> vector<2x32xf32>
    %c3 = arith.constant 3 : index
    %c0_20 = arith.constant 0 : index
    %29 = vector.load %arg2[%c3, %c0_20] : memref<16x256xf32, #tpu.memory_space<vmem>>, vector<1x32xf32>
    %30 = vector.broadcast %29 : vector<1x32xf32> to vector<2x32xf32>
    %31 = arith.addf %28, %30 : vector<2x32xf32>
    %cst_21 = arith.constant 0.000000e+00 : f32
    %32 = vector.broadcast %cst_21 : f32 to vector<2x32xf32>
    %33 = arith.maximumf %31, %32 : vector<2x32xf32>
    %c256 = arith.constant 256 : index
    %c0_22 = arith.constant 0 : index
    %34 = vector.load %arg5[%c256, %c0_22] : memref<832x128xf32, #tpu.memory_space<vmem>>, vector<32x16xf32>
    %cst_23 = arith.constant dense<0.000000e+00> : vector<2x16xf32>
    %35 = tpu.matmul %33, %34, %cst_23 {dimension_numbers = #tpu.dot_dimension_numbers<[1], [0], [0], [1], [0, 0, 1, 1], [], []>} : vector<2x32xf32>, vector<32x16xf32>, vector<2x16xf32> -> vector<2x16xf32>
    %c4 = arith.constant 4 : index
    %c0_24 = arith.constant 0 : index
    %36 = vector.load %arg2[%c4, %c0_24] : memref<16x256xf32, #tpu.memory_space<vmem>>, vector<1x16xf32>
    %37 = vector.broadcast %36 : vector<1x16xf32> to vector<2x16xf32>
    %38 = arith.addf %35, %37 : vector<2x16xf32>
    %cst_25 = arith.constant 5.000000e-01 : f32
    %39 = vector.broadcast %cst_25 : f32 to vector<2x16xf32>
    %40 = arith.mulf %39, %38 : vector<2x16xf32>
    %41 = math.tanh %40 : vector<2x16xf32>
    %cst_26 = arith.constant 5.000000e-01 : f32
    %42 = vector.broadcast %cst_26 : f32 to vector<2x16xf32>
    %43 = arith.mulf %42, %41 : vector<2x16xf32>
    %cst_27 = arith.constant 5.000000e-01 : f32
    %44 = vector.broadcast %cst_27 : f32 to vector<2x16xf32>
    %45 = arith.addf %43, %44 : vector<2x16xf32>
    %c256_28 = arith.constant 256 : index
    %c0_29 = arith.constant 0 : index
    %46 = vector.load %arg4[%c256_28, %c0_29] : memref<800x256xf32, #tpu.memory_space<vmem>>, vector<16x256xf32>
    %cst_30 = arith.constant dense<0.000000e+00> : vector<2x256xf32>
    %47 = tpu.matmul %45, %46, %cst_30 {dimension_numbers = #tpu.dot_dimension_numbers<[1], [0], [0], [1], [0, 0, 1, 1], [], []>} : vector<2x16xf32>, vector<16x256xf32>, vector<2x256xf32> -> vector<2x256xf32>
    %48 = arith.mulf %26, %47 : vector<2x256xf32>
    %c272 = arith.constant 272 : index
    %c0_31 = arith.constant 0 : index
    %49 = vector.load %arg4[%c272, %c0_31] : memref<800x256xf32, #tpu.memory_space<vmem>>, vector<256x256xf32>
    %cst_32 = arith.constant dense<0.000000e+00> : vector<2x256xf32>
    %50 = tpu.matmul %48, %49, %cst_32 {dimension_numbers = #tpu.dot_dimension_numbers<[1], [0], [0], [1], [0, 0, 1, 1], [], []>} : vector<2x256xf32>, vector<256x256xf32>, vector<2x256xf32> -> vector<2x256xf32>
    %c5 = arith.constant 5 : index
    %c0_33 = arith.constant 0 : index
    %51 = vector.load %arg2[%c5, %c0_33] : memref<16x256xf32, #tpu.memory_space<vmem>>, vector<1x256xf32>
    %52 = vector.broadcast %51 : vector<1x256xf32> to vector<2x256xf32>
    %53 = arith.addf %50, %52 : vector<2x256xf32>
    %cst_34 = arith.constant 0.000000e+00 : f32
    %54 = vector.broadcast %cst_34 : f32 to vector<2x256xf32>
    %55 = arith.maximumf %53, %54 : vector<2x256xf32>
    %c528 = arith.constant 528 : index
    %c0_35 = arith.constant 0 : index
    %56 = vector.load %arg4[%c528, %c0_35] : memref<800x256xf32, #tpu.memory_space<vmem>>, vector<256x256xf32>
    %cst_36 = arith.constant dense<0.000000e+00> : vector<2x256xf32>
    %57 = tpu.matmul %55, %56, %cst_36 {dimension_numbers = #tpu.dot_dimension_numbers<[1], [0], [0], [1], [0, 0, 1, 1], [], []>} : vector<2x256xf32>, vector<256x256xf32>, vector<2x256xf32> -> vector<2x256xf32>
    %c6 = arith.constant 6 : index
    %c0_37 = arith.constant 0 : index
    %58 = vector.load %arg2[%c6, %c0_37] : memref<16x256xf32, #tpu.memory_space<vmem>>, vector<1x256xf32>
    %59 = vector.broadcast %58 : vector<1x256xf32> to vector<2x256xf32>
    %60 = arith.addf %57, %59 : vector<2x256xf32>
    %cst_38 = arith.constant 0.000000e+00 : f32
    %61 = vector.broadcast %cst_38 : f32 to vector<2x256xf32>
    %62 = arith.maximumf %60, %61 : vector<2x256xf32>
    %63 = arith.addf %62, %48 : vector<2x256xf32>
    %cst_39 = arith.constant 0.000000e+00 : f32
    %64 = vector.broadcast %cst_39 : f32 to vector<2x256xf32>
    %65 = arith.maximumf %63, %64 : vector<2x256xf32>
    %c288 = arith.constant 288 : index
    %c0_40 = arith.constant 0 : index
    %66 = vector.load %arg5[%c288, %c0_40] : memref<832x128xf32, #tpu.memory_space<vmem>>, vector<256x32xf32>
    %cst_41 = arith.constant dense<0.000000e+00> : vector<2x32xf32>
    %67 = tpu.matmul %65, %66, %cst_41 {dimension_numbers = #tpu.dot_dimension_numbers<[1], [0], [0], [1], [0, 0, 1, 1], [], []>} : vector<2x256xf32>, vector<256x32xf32>, vector<2x32xf32> -> vector<2x32xf32>
    %c7 = arith.constant 7 : index
    %c0_42 = arith.constant 0 : index
    %68 = vector.load %arg2[%c7, %c0_42] : memref<16x256xf32, #tpu.memory_space<vmem>>, vector<1x32xf32>
    %69 = vector.broadcast %68 : vector<1x32xf32> to vector<2x32xf32>
    %70 = arith.addf %67, %69 : vector<2x32xf32>
    %cst_43 = arith.constant 0.000000e+00 : f32
    %71 = vector.broadcast %cst_43 : f32 to vector<2x32xf32>
    %72 = arith.maximumf %70, %71 : vector<2x32xf32>
    %c544 = arith.constant 544 : index
    %c0_44 = arith.constant 0 : index
    %73 = vector.load %arg5[%c544, %c0_44] : memref<832x128xf32, #tpu.memory_space<vmem>>, vector<32x16xf32>
    %cst_45 = arith.constant dense<0.000000e+00> : vector<2x16xf32>
    %74 = tpu.matmul %72, %73, %cst_45 {dimension_numbers = #tpu.dot_dimension_numbers<[1], [0], [0], [1], [0, 0, 1, 1], [], []>} : vector<2x32xf32>, vector<32x16xf32>, vector<2x16xf32> -> vector<2x16xf32>
    %c8 = arith.constant 8 : index
    %c0_46 = arith.constant 0 : index
    %75 = vector.load %arg2[%c8, %c0_46] : memref<16x256xf32, #tpu.memory_space<vmem>>, vector<1x16xf32>
    %76 = vector.broadcast %75 : vector<1x16xf32> to vector<2x16xf32>
    %77 = arith.addf %74, %76 : vector<2x16xf32>
    %cst_47 = arith.constant 5.000000e-01 : f32
    %78 = vector.broadcast %cst_47 : f32 to vector<2x16xf32>
    %79 = arith.mulf %78, %77 : vector<2x16xf32>
    %80 = math.tanh %79 : vector<2x16xf32>
    %cst_48 = arith.constant 5.000000e-01 : f32
    %81 = vector.broadcast %cst_48 : f32 to vector<2x16xf32>
    %82 = arith.mulf %81, %80 : vector<2x16xf32>
    %cst_49 = arith.constant 5.000000e-01 : f32
    %83 = vector.broadcast %cst_49 : f32 to vector<2x16xf32>
    %84 = arith.addf %82, %83 : vector<2x16xf32>
    %c784 = arith.constant 784 : index
    %c0_50 = arith.constant 0 : index
    %85 = vector.load %arg4[%c784, %c0_50] : memref<800x256xf32, #tpu.memory_space<vmem>>, vector<16x256xf32>
    %cst_51 = arith.constant dense<0.000000e+00> : vector<2x256xf32>
    %86 = tpu.matmul %84, %85, %cst_51 {dimension_numbers = #tpu.dot_dimension_numbers<[1], [0], [0], [1], [0, 0, 1, 1], [], []>} : vector<2x16xf32>, vector<16x256xf32>, vector<2x256xf32> -> vector<2x256xf32>
    %87 = arith.mulf %65, %86 : vector<2x256xf32>
    %c576 = arith.constant 576 : index
    %c0_52 = arith.constant 0 : index
    %88 = vector.load %arg5[%c576, %c0_52] : memref<832x128xf32, #tpu.memory_space<vmem>>, vector<256x11xf32>
    %cst_53 = arith.constant dense<0.000000e+00> : vector<2x11xf32>
    %89 = tpu.matmul %87, %88, %cst_53 {dimension_numbers = #tpu.dot_dimension_numbers<[1], [0], [0], [1], [0, 0, 1, 1], [], []>} : vector<2x256xf32>, vector<256x11xf32>, vector<2x11xf32> -> vector<2x11xf32>
    %c9 = arith.constant 9 : index
    %c0_54 = arith.constant 0 : index
    %90 = vector.load %arg2[%c9, %c0_54] : memref<16x256xf32, #tpu.memory_space<vmem>>, vector<1x11xf32>
    %91 = vector.broadcast %90 : vector<1x11xf32> to vector<2x11xf32>
    %92 = arith.addf %89, %91 : vector<2x11xf32>
    %c10 = arith.constant 10 : index
    %c0_55 = arith.constant 0 : index
    %93 = vector.load %arg2[%c10, %c0_55] : memref<16x256xf32, #tpu.memory_space<vmem>>, vector<1x11xf32>
    %c11 = arith.constant 11 : index
    %c0_56 = arith.constant 0 : index
    %94 = vector.load %arg2[%c11, %c0_56] : memref<16x256xf32, #tpu.memory_space<vmem>>, vector<1x11xf32>
    %95 = vector.extract_strided_slice %92 {offsets = [0, 0], sizes = [2, 4], strides = [1, 1]} : vector<2x11xf32> to vector<2x4xf32>
    %96 = vector.extract_strided_slice %93 {offsets = [0, 0], sizes = [1, 4], strides = [1, 1]} : vector<1x11xf32> to vector<1x4xf32>
    %97 = vector.extract_strided_slice %94 {offsets = [0, 0], sizes = [1, 4], strides = [1, 1]} : vector<1x11xf32> to vector<1x4xf32>
    %cst_57 = arith.constant dense<0.000000e+00> : vector<2xf32>
    %98 = vector.multi_reduction <add>, %95, %cst_57 [1] : vector<2x4xf32> to vector<2xf32>
    %99 = vector.shape_cast %98 : vector<2xf32> to vector<2x1xf32>
    %cst_58 = arith.constant 4.000000e+00 : f32
    %100 = vector.broadcast %cst_58 : f32 to vector<2x1xf32>
    %101 = arith.divf %99, %100 : vector<2x1xf32>
    %102 = vector.broadcast %101 : vector<2x1xf32> to vector<2x4xf32>
    %103 = arith.subf %95, %102 : vector<2x4xf32>
    %104 = arith.mulf %103, %103 : vector<2x4xf32>
    %cst_59 = arith.constant dense<0.000000e+00> : vector<2xf32>
    %105 = vector.multi_reduction <add>, %104, %cst_59 [1] : vector<2x4xf32> to vector<2xf32>
    %106 = vector.shape_cast %105 : vector<2xf32> to vector<2x1xf32>
    %cst_60 = arith.constant 4.000000e+00 : f32
    %107 = vector.broadcast %cst_60 : f32 to vector<2x1xf32>
    %108 = arith.divf %106, %107 : vector<2x1xf32>
    %109 = vector.broadcast %101 : vector<2x1xf32> to vector<2x4xf32>
    %110 = arith.subf %95, %109 : vector<2x4xf32>
    %cst_61 = arith.constant 9.99999974E-6 : f32
    %111 = vector.broadcast %cst_61 : f32 to vector<2x1xf32>
    %112 = arith.addf %108, %111 : vector<2x1xf32>
    %113 = math.rsqrt %112 : vector<2x1xf32>
    %114 = vector.broadcast %113 : vector<2x1xf32> to vector<2x4xf32>
    %115 = arith.mulf %110, %114 : vector<2x4xf32>
    %116 = vector.broadcast %96 : vector<1x4xf32> to vector<2x4xf32>
    %117 = arith.mulf %115, %116 : vector<2x4xf32>
    %118 = vector.broadcast %97 : vector<1x4xf32> to vector<2x4xf32>
    %119 = arith.addf %117, %118 : vector<2x4xf32>
    %cst_62 = arith.constant dense<0xFF800000> : vector<2xf32>
    %120 = vector.multi_reduction <maximumf>, %119, %cst_62 [1] : vector<2x4xf32> to vector<2xf32>
    %121 = vector.shape_cast %120 : vector<2xf32> to vector<2x1xf32>
    %122 = vector.broadcast %121 : vector<2x1xf32> to vector<2x4xf32>
    %123 = arith.subf %119, %122 : vector<2x4xf32>
    %124 = math.exp %123 : vector<2x4xf32>
    %cst_63 = arith.constant dense<0.000000e+00> : vector<2xf32>
    %125 = vector.multi_reduction <add>, %124, %cst_63 [1] : vector<2x4xf32> to vector<2xf32>
    %126 = vector.shape_cast %125 : vector<2xf32> to vector<2x1xf32>
    %127 = tpu.reciprocal %126 {approx = true} : vector<2x1xf32> -> vector<2x1xf32>
    %128 = vector.broadcast %127 : vector<2x1xf32> to vector<2x4xf32>
    %129 = arith.mulf %124, %128 : vector<2x4xf32>
    %130 = vector.extract_strided_slice %92 {offsets = [0, 4], sizes = [2, 7], strides = [1, 1]} : vector<2x11xf32> to vector<2x7xf32>
    %131 = vector.extract_strided_slice %93 {offsets = [0, 4], sizes = [1, 7], strides = [1, 1]} : vector<1x11xf32> to vector<1x7xf32>
    %132 = vector.extract_strided_slice %94 {offsets = [0, 4], sizes = [1, 7], strides = [1, 1]} : vector<1x11xf32> to vector<1x7xf32>
    %cst_64 = arith.constant dense<0.000000e+00> : vector<2xf32>
    %133 = vector.multi_reduction <add>, %130, %cst_64 [1] : vector<2x7xf32> to vector<2xf32>
    %134 = vector.shape_cast %133 : vector<2xf32> to vector<2x1xf32>
    %cst_65 = arith.constant 7.000000e+00 : f32
    %135 = vector.broadcast %cst_65 : f32 to vector<2x1xf32>
    %136 = arith.divf %134, %135 : vector<2x1xf32>
    %137 = vector.broadcast %136 : vector<2x1xf32> to vector<2x7xf32>
    %138 = arith.subf %130, %137 : vector<2x7xf32>
    %139 = arith.mulf %138, %138 : vector<2x7xf32>
    %cst_66 = arith.constant dense<0.000000e+00> : vector<2xf32>
    %140 = vector.multi_reduction <add>, %139, %cst_66 [1] : vector<2x7xf32> to vector<2xf32>
    %141 = vector.shape_cast %140 : vector<2xf32> to vector<2x1xf32>
    %cst_67 = arith.constant 7.000000e+00 : f32
    %142 = vector.broadcast %cst_67 : f32 to vector<2x1xf32>
    %143 = arith.divf %141, %142 : vector<2x1xf32>
    %144 = vector.broadcast %136 : vector<2x1xf32> to vector<2x7xf32>
    %145 = arith.subf %130, %144 : vector<2x7xf32>
    %cst_68 = arith.constant 9.99999974E-6 : f32
    %146 = vector.broadcast %cst_68 : f32 to vector<2x1xf32>
    %147 = arith.addf %143, %146 : vector<2x1xf32>
    %148 = math.rsqrt %147 : vector<2x1xf32>
    %149 = vector.broadcast %148 : vector<2x1xf32> to vector<2x7xf32>
    %150 = arith.mulf %145, %149 : vector<2x7xf32>
    %151 = vector.broadcast %131 : vector<1x7xf32> to vector<2x7xf32>
    %152 = arith.mulf %150, %151 : vector<2x7xf32>
    %153 = vector.broadcast %132 : vector<1x7xf32> to vector<2x7xf32>
    %154 = arith.addf %152, %153 : vector<2x7xf32>
    %cst_69 = arith.constant dense<0xFF800000> : vector<2xf32>
    %155 = vector.multi_reduction <maximumf>, %154, %cst_69 [1] : vector<2x7xf32> to vector<2xf32>
    %156 = vector.shape_cast %155 : vector<2xf32> to vector<2x1xf32>
    %157 = vector.broadcast %156 : vector<2x1xf32> to vector<2x7xf32>
    %158 = arith.subf %154, %157 : vector<2x7xf32>
    %159 = math.exp %158 : vector<2x7xf32>
    %cst_70 = arith.constant dense<0.000000e+00> : vector<2xf32>
    %160 = vector.multi_reduction <add>, %159, %cst_70 [1] : vector<2x7xf32> to vector<2xf32>
    %161 = vector.shape_cast %160 : vector<2xf32> to vector<2x1xf32>
    %162 = tpu.reciprocal %161 {approx = true} : vector<2x1xf32> -> vector<2x1xf32>
    %163 = vector.broadcast %162 : vector<2x1xf32> to vector<2x7xf32>
    %164 = arith.mulf %159, %163 : vector<2x7xf32>
    %165 = tpu.concatenate %129, %164 in 1 : vector<2x4xf32>, vector<2x7xf32> -> vector<2x11xf32>
    %c0_71 = arith.constant 0 : index
    %c0_72 = arith.constant 0 : index
    %166 = vector.load %arg6[%c0_71, %c0_72] : memref<2x11xf32, #tpu.memory_space<vmem>>, vector<2x11xf32>
    tpu.vector_store %arg6[%c0_71, %c0_72], %165 {strides = array<i32>} : memref<2x11xf32, #tpu.memory_space<vmem>>, vector<2x11xf32>,
    return
  }
}

</mosaic_0001>

<bundles_post_ra>
// kernel: dnfusion_forward.1
= control target key start
LH: loop header
LB: loop body
LE: loop exit
PB: predicated region body
PF: predicated region fallthrough
CT: control target
= control target key end

     0   :  { %11 = vsyncpa [#allocation3], 0  ;;  %s2504_s0 = inlined_call_operand.vmem [shape: f32[2,96], index: 0, kind: input, shape index: {}]   ;;  %s2505_s1 = inlined_call_operand.vmem [shape: f32[2,64], index: 1, kind: input, shape index: {}]   ;;  %s2506_s2 = inlined_call_operand.vmem [shape: f32[16,256], index: 2, kind: input, shape index: {}]   ;;  %s2507_s3 = inlined_call_operand.hbm [shape: f32[160,512], index: 3, kind: input, shape index: {}]   ;;  %s2508_s4 = inlined_call_operand.hbm [shape: f32[800,256], index: 4, kind: input, shape index: {}]   ;;  %s2509_s5 = inlined_call_operand.hbm [shape: f32[832,128], index: 5, kind: input, shape index: {}]   ;;  %s2510_s6 = inlined_call_operand.vmem [shape: f32[2,11], index: 6, kind: output, shape index: {}]  }
   0x1   :  { %12 = vsyncpa [#allocation5], 0  ;;  %s2285_s21 = smov [#allocation4]   ;;  %s2215_s25 = scalar_lea.hbm %s2508_s4, 25600 }
   0x2   :  { %s36_s22 = sshll.u32 %s2285_s21, 4  ;;  %p2216_p0 = scmp.ne.s32.totalorder %s2508_s4, %s2215_s25  ;;  %s37_s22 = int_to_ptr.vmem [resolvable:$true] %s36_s22 }
   0x3   :  { %p2219_p1 = scmp.lt.u32.totalorder %s2215_s25, %s2508_s4 }
   0x5   :  { %p2221_p2 = pnand %p2219_p1, %p2216_p0 }
   0x7   :  { %2224 = shalt.err (!%p2221_p2)
}
   0x8   :  { %s2225_s30 = scalar_lea.vmem %s37_s22, 25600  ;;  %p2230_p4 = scmp.lt.s32.totalorder %s37_s22, %s37_s22 }
   0x9   :  { %p2226_p3 = scmp.ne.s32.totalorder %s37_s22, %s2225_s30  ;;  %p2231_p5 = scmp.lt.s32.totalorder %s2225_s30, %s2225_s30 }
   0xb   :  { %p2232_p6 = por %p2231_p5, %p2230_p4 }
   0xd   :  { %p2233_p7 = pnand %p2232_p6, %p2226_p3 }
   0xf   :  { %2236 = shalt.err (!%p2233_p7)
}
  0x10   :  { %s2286_s7 = smov 256   ;;  %s2287_s8 = smov 16  }
  0x11   :  { %42 = dma.hbm_to_vmem [thread:$0]  %s2508_s4, 25600, %s37_s22, [#allocation5], %s2286_s7, %s2286_s7, %s2287_s8  }
  0x12   :  { %s2288_s11 = smov [#allocation2]   ;;  %s2237_s15 = scalar_lea.hbm %s2507_s3, 10240 }
  0x13   :  { %s24_s12 = sshll.u32 %s2288_s11, 4  ;;  %p2238_p8 = scmp.ne.s32.totalorder %s2507_s3, %s2237_s15  ;;  %s25_s12 = int_to_ptr.vmem [resolvable:$true] %s24_s12 }
  0x14   :  { %p2241_p9 = scmp.lt.u32.totalorder %s2237_s15, %s2507_s3 }
  0x16   :  { %p2243_p10 = pnand %p2241_p9, %p2238_p8 }
  0x18   :  { %2246 = shalt.err (!%p2243_p10)
}
  0x19   :  { %s2247_s20 = scalar_lea.vmem %s25_s12, 10240  ;;  %p2252_p12 = scmp.lt.s32.totalorder %s25_s12, %s25_s12 }
  0x1a   :  { %p2248_p11 = scmp.ne.s32.totalorder %s25_s12, %s2247_s20  ;;  %p2253_p13 = scmp.lt.s32.totalorder %s2247_s20, %s2247_s20 }
  0x1c   :  { %p2254_p0 = por %p2253_p13, %p2252_p12 }
  0x1e   :  { %p2255_p1 = pnand %p2254_p0, %p2248_p11 }
  0x20   :  { %2258 = shalt.err (!%p2255_p1)
}
  0x21   :  { %s2289_s4 = smov 512   ;;  %s2290_s21 = smov 32  }
  0x22   :  { %30 = dma.hbm_to_vmem [thread:$0]  %s2507_s3, 10240, %s25_s12, [#allocation3], %s2289_s4, %s2289_s4, %s2290_s21  }
  0x23   :  { %s2291_s24 = smov [#allocation6]   ;;  %s2259_s28 = scalar_lea.hbm %s2509_s5, 13312 }
  0x24   :  { %s48_s25 = sshll.u32 %s2291_s24, 4  ;;  %p2260_p2 = scmp.ne.s32.totalorder %s2509_s5, %s2259_s28  ;;  %s49_s25 = int_to_ptr.vmem [resolvable:$true] %s48_s25 }
  0x25   :  { %p2263_p3 = scmp.lt.u32.totalorder %s2259_s28, %s2509_s5 }
  0x27   :  { %p2265_p4 = pnand %p2263_p3, %p2260_p2 }
  0x29   :  { %2268 = shalt.err (!%p2265_p4)
}
  0x2a   :  { %s2269_s9 = scalar_lea.vmem %s49_s25, 13312  ;;  %p2274_p6 = scmp.lt.s32.totalorder %s49_s25, %s49_s25 }
  0x2b   :  { %p2270_p5 = scmp.ne.s32.totalorder %s49_s25, %s2269_s9  ;;  %p2275_p7 = scmp.lt.s32.totalorder %s2269_s9, %s2269_s9 }
  0x2d   :  { %p2276_p8 = por %p2275_p7, %p2274_p6 }
  0x2f   :  { %p2277_p9 = pnand %p2276_p8, %p2270_p5 }
  0x31   :  { %2280 = shalt.err (!%p2277_p9)
}
  0x32   :  { %s2292_s3 = smov 128   ;;  %s2293_s10 = smov 8  }
  0x33   :  { %54 = dma.hbm_to_vmem [thread:$0]  %s2509_s5, 13312, %s49_s25, [#allocation5], %s2292_s3, %s2292_s3, %s2293_s10  }
  0x34   :  { %2281 = dma.done.wait [#allocation3], 10240  }
  0x35   :  { %2282 = vsyncadd [#allocation3], 4294957056 }
  0x36   :  { %2283 = dma.done.wait [#allocation5], 38912  }
  0x37   :  { %2284 = vsyncadd [#allocation5], 4294928384  ;;  %v2294_v0 = vmov 0.0   ;;  %v66_v1 = vld [vmem:[#allocation2 + $0x8] sm:$0xff]  ;;  %v65_v3 = vld [vmem:[#allocation2] sm:$0xff]  ;;  %vm146_vm0 = vcmask 523264  }
  0x38   :  { %214 = vmatprep.mubr.f32.mxu1 %v2294_v0  ;;  %360 = vmatprep.mubr.f32.mxu0 %v2294_v0  ;;  %v70_v2 = vld [vmem:[#allocation2 + $0x28] sm:$0xff]  ;;  %v69_v5 = vld [vmem:[#allocation2 + $0x20] sm:$0xff]  ;;  %v117_v56 = vld [vmem:[#allocation2 + $0x198] sm:$0xff]  ;;  %vm292_vm1 = vcmask 785408   ;;  %vm2296_vm2 = vmmov 0   ;;  %vm732_vm3 = vcmask 261120  }
  0x39   :  { %v1826_v4 = vpack.c.bf16 %v70_v2, %v66_v1  ;;  %v74_v6 = vld [vmem:[#allocation2 + $0x48] sm:$0xff]  ;;  %v1828_v8 = vpack.c.bf16 %v69_v5, %v65_v3  ;;  %v73_v10 = vld [vmem:[#allocation2 + $0x40] sm:$0xff]  ;;  %v121_v57 = vld [vmem:[#allocation2 + $0x1b8] sm:$0xff]  ;;  %vm814_vm4 = vcmask 130048   ;;  %s2297_s9 = smov 124   ;;  %vm1598_vm5 = vcmask 50176  }
  0x3a   :  { %v78_v7 = vld [vmem:[#allocation2 + $0x68] sm:$0xff]  ;;  %v77_v11 = vld [vmem:[#allocation2 + $0x60] sm:$0xff]  ;;  %v1810_v59 = vpack.c.bf16 %v121_v57, %v117_v56  ;;  %v116_v60 = vld [vmem:[#allocation2 + $0x190] sm:$0xff]  ;;  %vm1566_vm6 = vcmask 25600   ;;  %vm1619_vm7 = vcmask 82976   ;;  %vm1635_vm8 = vcmask 31744  }
  0x3b   :  { %v1830_v9 = vpack.c.bf16 %v78_v7, %v74_v6  ;;  %v115_v12 = vld [vmem:[#allocation2 + $0x188] sm:$0xff]  ;;  %1827 = vmatprep.subr.bf16.mxu0 %v1826_v4  ;;  %v114_v14 = vld [vmem:[#allocation2 + $0x180] sm:$0xff]  ;;  %v1832_v16 = vpack.c.bf16 %v77_v11, %v73_v10  ;;  %v120_v61 = vld [vmem:[#allocation2 + $0x1b0] sm:$0xff]  ;;  %vm1637_vm9 = vcmask 82944  }
  0x3c   :  { %v119_v13 = vld [vmem:[#allocation2 + $0x1a8] sm:$0xff]  ;;  %v118_v15 = vld [vmem:[#allocation2 + $0x1a0] sm:$0xff]  ;;  %1829 = vmatpush1.bf16.msra.mxu0 %v1828_v8  ;;  %v472_v3 = vld [vmem:[#allocation4 + $0x18] sm:$0xff]  ;;  %v1812_v7 = vpack.c.bf16 %v120_v61, %v116_v60 }
  0x3d   :  { %v1794_v17 = vpack.c.bf16 %v119_v13, %v115_v12  ;;  %v1796_v18 = vpack.c.bf16 %v118_v15, %v114_v14  ;;  %v82_v19 = vld [vmem:[#allocation2 + $0x88] sm:$0xff]  ;;  %v81_v21 = vld [vmem:[#allocation2 + $0x80] sm:$0xff]  ;;  %1831 = vmatprep.subr.bf16.mxu0 %v1830_v9  ;;  %v125_v4 = vld [vmem:[#allocation2 + $0x1d8] sm:$0xff] }
  0x3e   :  { %v86_v20 = vld [vmem:[#allocation2 + $0xa8] sm:$0xff]  ;;  %v85_v23 = vld [vmem:[#allocation2 + $0xa0] sm:$0xff]  ;;  %v129_v5 = vld [vmem:[#allocation2 + $0x1f8] sm:$0xff] }
  0x3f   :  { %v1834_v22 = vpack.c.bf16 %v86_v20, %v82_v19  ;;  %v123_v24 = vld [vmem:[#allocation2 + $0x1c8] sm:$0xff]  ;;  %1795 = vmatprep.subr.bf16.mxu1 %v1794_v17  ;;  %v122_v27 = vld [vmem:[#allocation2 + $0x1c0] sm:$0xff]  ;;  %v1836_v32 = vpack.c.bf16 %v85_v23, %v81_v21  ;;  %v1814_v10 = vpack.c.bf16 %v129_v5, %v125_v4  ;;  %v124_v11 = vld [vmem:[#allocation2 + $0x1d0] sm:$0xff] }
  0x40   :  { %v127_v25 = vld [vmem:[#allocation2 + $0x1e8] sm:$0xff]  ;;  %v126_v28 = vld [vmem:[#allocation2 + $0x1e0] sm:$0xff]  ;;  %1797 = vmatpush1.bf16.msra.mxu1 %v1796_v18  ;;  %1833 = vmatpush1.bf16.msra.mxu0 %v1832_v16  ;;  %v128_v12 = vld [vmem:[#allocation2 + $0x1f0] sm:$0xff] }
  0x41   :  { %v1798_v26 = vpack.c.bf16 %v127_v25, %v123_v24  ;;  %v90_v29 = vld [vmem:[#allocation2 + $0xc8] sm:$0xff]  ;;  %v1800_v30 = vpack.c.bf16 %v126_v28, %v122_v27  ;;  %v130_v35 = vld [vmem:[#allocation2 + $0x200] sm:$0xff]  ;;  %1835 = vmatprep.subr.bf16.mxu0 %v1834_v22  ;;  %v471_v14 = vld [vmem:[#allocation4 + $0x10] sm:$0xff]  ;;  %v1816_v20 = vpack.c.bf16 %v128_v12, %v124_v11 }
  0x42   :  { %v94_v31 = vld [vmem:[#allocation2 + $0xe8] sm:$0xff]  ;;  %v89_v37 = vld [vmem:[#allocation2 + $0xc0] sm:$0xff]  ;;  %v133_v15 = vld [vmem:[#allocation2 + $0x218] sm:$0xff] }
  0x43   :  { %1799 = vmatprep.subr.bf16.mxu1 %v1798_v26  ;;  %v131_v33 = vld [vmem:[#allocation2 + $0x208] sm:$0xff]  ;;  %v1838_v36 = vpack.c.bf16 %v94_v31, %v90_v29  ;;  %v93_v38 = vld [vmem:[#allocation2 + $0xe0] sm:$0xff]  ;;  %v137_v16 = vld [vmem:[#allocation2 + $0x238] sm:$0xff] }
  0x44   :  { %v135_v34 = vld [vmem:[#allocation2 + $0x228] sm:$0xff]  ;;  %v134_v40 = vld [vmem:[#allocation2 + $0x220] sm:$0xff]  ;;  %1801 = vmatpush1.bf16.msra.mxu1 %v1800_v30  ;;  %1837 = vmatpush1.bf16.msra.mxu0 %v1836_v32  ;;  %v1840_v46 = vpack.c.bf16 %v93_v38, %v89_v37  ;;  %v476_v18 = vld [vmem:[#allocation4 + $0x38] sm:$0xff]  ;;  %v1818_v23 = vpack.c.bf16 %v137_v16, %v133_v15 }
  0x45   :  { %v1802_v39 = vpack.c.bf16 %v135_v34, %v131_v33  ;;  %v98_v41 = vld [vmem:[#allocation2 + $0x108] sm:$0xff]  ;;  %v1804_v44 = vpack.c.bf16 %v134_v40, %v130_v35  ;;  %v138_v48 = vld [vmem:[#allocation2 + $0x240] sm:$0xff]  ;;  %1839 = vmatprep.subr.bf16.mxu0 %v1838_v36  ;;  %v132_v24 = vld [vmem:[#allocation2 + $0x210] sm:$0xff] }
  0x46   :  { %v102_v42 = vld [vmem:[#allocation2 + $0x128] sm:$0xff]  ;;  %v142_v49 = vld [vmem:[#allocation2 + $0x260] sm:$0xff]  ;;  %v136_v25 = vld [vmem:[#allocation2 + $0x230] sm:$0xff] }
  0x47   :  { %v139_v43 = vld [vmem:[#allocation2 + $0x248] sm:$0xff]  ;;  %1803 = vmatprep.subr.bf16.mxu1 %v1802_v39  ;;  %v1842_v50 = vpack.c.bf16 %v102_v42, %v98_v41  ;;  %v97_v51 = vld [vmem:[#allocation2 + $0x100] sm:$0xff]  ;;  %v1808_v55 = vpack.c.bf16 %v142_v49, %v138_v48  ;;  %v475_v27 = vld [vmem:[#allocation4 + $0x30] sm:$0xff]  ;;  %v1820_v32 = vpack.c.bf16 %v136_v25, %v132_v24 }
  0x48   :  { %v143_v45 = vld [vmem:[#allocation2 + $0x268] sm:$0xff]  ;;  %v101_v52 = vld [vmem:[#allocation2 + $0x120] sm:$0xff]  ;;  %1805 = vmatpush1.bf16.msra.mxu1 %v1804_v44  ;;  %1841 = vmatpush1.bf16.msra.mxu0 %v1840_v46  ;;  %v141_v28 = vld [vmem:[#allocation2 + $0x258] sm:$0xff] }
  0x49   :  { %v1806_v47 = vpack.c.bf16 %v143_v45, %v139_v43  ;;  %v106_v53 = vld [vmem:[#allocation2 + $0x148] sm:$0xff]  ;;  %v1844_v58 = vpack.c.bf16 %v101_v52, %v97_v51  ;;  %1843 = vmatprep.subr.bf16.mxu0 %v1842_v50  ;;  %v105_v63 = vld [vmem:[#allocation2 + $0x140] sm:$0xff]  ;;  %v145_v29 = vld [vmem:[#allocation2 + $0x278] sm:$0xff] }
  0x4a   :  { %v110_v54 = vld [vmem:[#allocation2 + $0x168] sm:$0xff]  ;;  %v109_v1 = vld [vmem:[#allocation2 + $0x160] sm:$0xff]  ;;  %v480_v31 = vld [vmem:[#allocation4 + $0x58] sm:$0xff]  ;;  %v1822_v35 = vpack.c.bf16 %v145_v29, %v141_v28 }
  0x4b   :  { %1807 = vmatprep.subr.bf16.mxu1 %v1806_v47  ;;  %v1846_v62 = vpack.c.bf16 %v110_v54, %v106_v53  ;;  %v470_v2 = vld [vmem:[#allocation4 + $0x8] sm:$0xff]  ;;  %v2374_v6 = vld [vmem:[%s2505_s1] sm:$0x3]  ;;  %v1848_v8 = vpack.c.bf16 %v109_v1, %v105_v63  ;;  %v140_v36 = vld [vmem:[#allocation2 + $0x250] sm:$0xff] }
  0x4c   :  { %1809 = vmatpush1.bf16.msra.mxu1 %v1808_v55  ;;  %1845 = vmatpush1.bf16.msra.mxu0 %v1844_v58  ;;  %v469_v9 = vld [vmem:[#allocation4] sm:$0xff]  ;;  %v1874_v13 = vpack.c.bf16 %v472_v3, %v470_v2  ;;  %v474_v17 = vld [vmem:[#allocation4 + $0x28] sm:$0xff]  ;;  %v144_v37 = vld [vmem:[#allocation2 + $0x270] sm:$0xff] }
  0x4d   :  { %1811 = vmatprep.subr.bf16.mxu1 %v1810_v59  ;;  %1847 = vmatprep.subr.bf16.mxu0 %v1846_v62  ;;  %v2381_v19 = vld [vmem:[%s2504_s0] sm:$0x3]  ;;  %v1876_v21 = vpack.c.bf16 %v471_v14, %v469_v9  ;;  %v1878_v26 = vpack.c.bf16 %v476_v18, %v474_v17  ;;  %v478_v30 = vld [vmem:[#allocation4 + $0x48] sm:$0xff]  ;;  %v479_v39 = vld [vmem:[#allocation4 + $0x50] sm:$0xff]  ;;  %v1824_v44 = vpack.c.bf16 %v144_v37, %v140_v36 }
  0x4e   :  { %v473_v22 = vld [vmem:[#allocation4 + $0x20] sm:$0xff]  ;;  %v1882_v38 = vpack.c.bf16 %v480_v31, %v478_v30  ;;  %v68_v40 = vld [vmem:[#allocation2 + $0x18] sm:$0xff]  ;;  %v482_v42 = vld [vmem:[#allocation4 + $0x68] sm:$0xff] }
  0x4f   :  { %1645 = vmatmul.mubr.msk.f32.vlgmr.msra.gmra.mrb[0].mxu1 %vm146_vm0, %v2374_v6  ;;  %v1880_v33 = vpack.c.bf16 %v475_v27, %v473_v22  ;;  %v477_v34 = vld [vmem:[#allocation4 + $0x40] sm:$0xff]  ;;  %v72_v41 = vld [vmem:[#allocation2 + $0x38] sm:$0xff]  ;;  %v67_v48 = vld [vmem:[#allocation2 + $0x10] sm:$0xff] }
  0x50   :  { %1813 = vmatpush1.bf16.msra.mxu1 %v1812_v7  ;;  %285 = vmatprep.mubr.f32.mxu1 %v2294_v0  ;;  %v484_v43 = vld [vmem:[#allocation4 + $0x78] sm:$0xff]  ;;  %v1884_v45 = vpack.c.bf16 %v479_v39, %v477_v34  ;;  %v481_v46 = vld [vmem:[#allocation4 + $0x60] sm:$0xff]  ;;  %v1850_v47 = vpack.c.bf16 %v72_v41, %v68_v40  ;;  %v71_v49 = vld [vmem:[#allocation2 + $0x30] sm:$0xff] }
  0x51   :  { %1849 = vmatpush1.bf16.msra.mxu0 %v1848_v8  ;;  %1815 = vmatprep.subr.bf16.mxu1 %v1814_v10  ;;  %v1886_v50 = vpack.c.bf16 %v484_v43, %v482_v42  ;;  %v483_v51 = vld [vmem:[#allocation4 + $0x70] sm:$0xff]  ;;  %v76_v52 = vld [vmem:[#allocation2 + $0x58] sm:$0xff]  ;;  %v486_v54 = vld [vmem:[#allocation4 + $0x88] sm:$0xff]  ;;  %v1852_v56 = vpack.c.bf16 %v71_v49, %v67_v48 }
  0x52   :  { %1875 = vmatprep.subr.bf16.mxu0 %v1874_v13  ;;  %v80_v53 = vld [vmem:[#allocation2 + $0x78] sm:$0xff]  ;;  %v1888_v57 = vpack.c.bf16 %v483_v51, %v481_v46  ;;  %v485_v58 = vld [vmem:[#allocation4 + $0x80] sm:$0xff]  ;;  %v75_v60 = vld [vmem:[#allocation2 + $0x50] sm:$0xff] }
  0x53   :  { %v488_v55 = vld [vmem:[#allocation4 + $0x98] sm:$0xff]  ;;  %v1854_v59 = vpack.c.bf16 %v80_v53, %v76_v52  ;;  %v79_v61 = vld [vmem:[#allocation2 + $0x70] sm:$0xff]  ;;  %v490_v3 = vld [vmem:[#allocation4 + $0xa8] sm:$0xff] }
  0x54   :  { %1647 = vmatmul.mubr.msk.f32.vlgmr.msra.gmra.mrb[0].mxu0 %vm292_vm1, %v2381_v19  ;;  %1817 = vmatpush1.bf16.msra.mxu1 %v1816_v20  ;;  %v1890_v62 = vpack.c.bf16 %v488_v55, %v486_v54  ;;  %v487_v63 = vld [vmem:[#allocation4 + $0x90] sm:$0xff]  ;;  %v84_v1 = vld [vmem:[#allocation2 + $0x98] sm:$0xff]  ;;  %v1856_v5 = vpack.c.bf16 %v79_v61, %v75_v60  ;;  %v489_v8 = vld [vmem:[#allocation4 + $0xa0] sm:$0xff] }
  0x55   :  { %1877 = vmatpush1.bf16.msra.mxu0 %v1876_v21  ;;  %1819 = vmatprep.subr.bf16.mxu1 %v1818_v23  ;;  %v88_v2 = vld [vmem:[#allocation2 + $0xb8] sm:$0xff]  ;;  %v1892_v7 = vpack.c.bf16 %v487_v63, %v485_v58  ;;  %v83_v10 = vld [vmem:[#allocation2 + $0x90] sm:$0xff]  ;;  %v494_v16 = vld [vmem:[#allocation4 + $0xc8] sm:$0xff] }
  0x56   :  { %1879 = vmatprep.subr.bf16.mxu0 %v1878_v26  ;;  %v492_v4 = vld [vmem:[#allocation4 + $0xb8] sm:$0xff]  ;;  %v1858_v9 = vpack.c.bf16 %v88_v2, %v84_v1  ;;  %v87_v11 = vld [vmem:[#allocation2 + $0xb0] sm:$0xff]  ;;  %v493_v20 = vld [vmem:[#allocation4 + $0xc0] sm:$0xff] }
  0x57   :  { %v1894_v12 = vpack.c.bf16 %v492_v4, %v490_v3  ;;  %v491_v13 = vld [vmem:[#allocation4 + $0xb0] sm:$0xff]  ;;  %v92_v14 = vld [vmem:[#allocation2 + $0xd8] sm:$0xff]  ;;  %v1860_v17 = vpack.c.bf16 %v87_v11, %v83_v10  ;;  %v498_v28 = vld [vmem:[#allocation4 + $0xe8] sm:$0xff] }
  0x58   :  { %1821 = vmatpush1.bf16.msra.mxu1 %v1820_v32  ;;  %v96_v15 = vld [vmem:[#allocation2 + $0xf8] sm:$0xff]  ;;  %v1896_v18 = vpack.c.bf16 %v491_v13, %v489_v8  ;;  %v91_v22 = vld [vmem:[#allocation2 + $0xd0] sm:$0xff]  ;;  %v497_v32 = vld [vmem:[#allocation4 + $0xe0] sm:$0xff] }
  0x59   :  { %1881 = vmatpush1.bf16.msra.mxu0 %v1880_v33  ;;  %1823 = vmatprep.subr.bf16.mxu1 %v1822_v35  ;;  %v1862_v21 = vpack.c.bf16 %v96_v15, %v92_v14  ;;  %v95_v23 = vld [vmem:[#allocation2 + $0xf0] sm:$0xff]  ;;  %v100_v26 = vld [vmem:[#allocation2 + $0x118] sm:$0xff]  ;;  %v502_v40 = vld [vmem:[#allocation4 + $0x108] sm:$0xff] }
  0x5a   :  { %1883 = vmatprep.subr.bf16.mxu0 %v1882_v38  ;;  %v495_v25 = vld [vmem:[#allocation4 + $0xd0] sm:$0xff]  ;;  %v104_v27 = vld [vmem:[#allocation2 + $0x138] sm:$0xff]  ;;  %v1864_v30 = vpack.c.bf16 %v95_v23, %v91_v22  ;;  %v501_v48 = vld [vmem:[#allocation4 + $0x100] sm:$0xff] }
  0x5b   :  { %v500_v29 = vld [vmem:[#allocation4 + $0xf8] sm:$0xff]  ;;  %v1900_v31 = vpack.c.bf16 %v495_v25, %v493_v20  ;;  %v1866_v33 = vpack.c.bf16 %v104_v27, %v100_v26  ;;  %v99_v34 = vld [vmem:[#allocation2 + $0x110] sm:$0xff]  ;;  %v505_v55 = vld [vmem:[#allocation4 + $0x120] sm:$0xff] }
  0x5c   :  { %1825 = vmatpush1.bf16.msra.mxu1 %v1824_v44  ;;  %v103_v35 = vld [vmem:[#allocation2 + $0x130] sm:$0xff]  ;;  %v1902_v36 = vpack.c.bf16 %v500_v29, %v498_v28  ;;  %v108_v38 = vld [vmem:[#allocation2 + $0x158] sm:$0xff]  ;;  %v509_v61 = vld [vmem:[#allocation4 + $0x140] sm:$0xff] }
  0x5d   :  { %1885 = vmatpush1.bf16.msra.mxu0 %v1884_v45  ;;  %1851 = vmatprep.subr.bf16.mxu1 %v1850_v47  ;;  %v499_v37 = vld [vmem:[#allocation4 + $0xf0] sm:$0xff]  ;;  %v112_v39 = vld [vmem:[#allocation2 + $0x178] sm:$0xff]  ;;  %v1868_v42 = vpack.c.bf16 %v103_v35, %v99_v34  ;;  %v514_v63 = vld [vmem:[#allocation4 + $0x168] sm:$0xff] }
  0x5e   :  { %1887 = vmatprep.subr.bf16.mxu0 %v1886_v50  ;;  %v504_v41 = vld [vmem:[#allocation4 + $0x118] sm:$0xff]  ;;  %v1904_v43 = vpack.c.bf16 %v499_v37, %v497_v32  ;;  %v1870_v44 = vpack.c.bf16 %v112_v39, %v108_v38  ;;  %v107_v45 = vld [vmem:[#allocation2 + $0x150] sm:$0xff]  ;;  %v506_v50 = vld [vmem:[#allocation4 + $0x128] sm:$0xff] }
  0x5f   :  { %1646 = vmatmul.mubr.msk.f32.vlgmr.msra.gmra.mrb[2].mxu1 %vm146_vm0, %v2374_v6  ;;  %v496_v6 = vld [vmem:[#allocation4 + $0xd8] sm:$0xff]  ;;  %v111_v46 = vld [vmem:[#allocation2 + $0x170] sm:$0xff]  ;;  %v1906_v47 = vpack.c.bf16 %v504_v41, %v502_v40  ;;  %v513_v4 = vld [vmem:[#allocation4 + $0x160] sm:$0xff] }
  0x60   :  { %1853 = vmatpush1.bf16.msra.mxu1 %v1852_v56  ;;  %431 = vmatprep.mubr.f32.mxu1 %v2294_v0  ;;  %v1898_v24 = vpack.c.bf16 %v496_v6, %v494_v16  ;;  %v503_v49 = vld [vmem:[#allocation4 + $0x110] sm:$0xff]  ;;  %v508_v51 = vld [vmem:[#allocation4 + $0x138] sm:$0xff]  ;;  %v1872_v52 = vpack.c.bf16 %v111_v46, %v107_v45  ;;  %v517_v11 = vld [vmem:[#allocation4 + $0x180] sm:$0xff] }
  0x61   :  { %1889 = vmatpush1.bf16.msra.mxu0 %v1888_v57  ;;  %1855 = vmatprep.subr.bf16.mxu1 %v1854_v59  ;;  %v1908_v53 = vpack.c.bf16 %v503_v49, %v501_v48  ;;  %v1910_v54 = vpack.c.bf16 %v508_v51, %v506_v50  ;;  %v507_v56 = vld [vmem:[#allocation4 + $0x130] sm:$0xff]  ;;  %v510_v57 = vld [vmem:[#allocation4 + $0x148] sm:$0xff]  ;;  %v512_v58 = vld [vmem:[#allocation4 + $0x158] sm:$0xff] }
  0x62   :  { %1891 = vmatprep.subr.bf16.mxu0 %v1890_v62  ;;  %v1912_v59 = vpack.c.bf16 %v507_v56, %v505_v55  ;;  %v1914_v60 = vpack.c.bf16 %v512_v58, %v510_v57  ;;  %v511_v62 = vld [vmem:[#allocation4 + $0x150] sm:$0xff]  ;;  %v516_v1 = vld [vmem:[#allocation4 + $0x178] sm:$0xff]  ;;  %v522_v13 = vld [vmem:[#allocation4 + $0x1a8] sm:$0xff] }
  0x63   :  { %v1916_v2 = vpack.c.bf16 %v511_v62, %v509_v61  ;;  %v1918_v3 = vpack.c.bf16 %v516_v1, %v514_v63  ;;  %v520_v8 = vld [vmem:[#allocation4 + $0x198] sm:$0xff]  ;;  %v521_v16 = vld [vmem:[#allocation4 + $0x1a0] sm:$0xff]  ;;  %v523_v6 = vld [vmem:[#allocation4 + $0x1b0] sm:$0xff]  ;;  %v441_v1 = vlaneseq }
  0x64   :  { %1857 = vmatpush1.bf16.msra.mxu1 %v1856_v5  ;;  %v515_v5 = vld [vmem:[#allocation4 + $0x170] sm:$0xff]  ;;  %v524_v14 = vld [vmem:[#allocation4 + $0x1b8] sm:$0xff]  ;;  %v525_v22 = vld [vmem:[#allocation4 + $0x1c0] sm:$0xff] }
  0x65   :  { %1893 = vmatpush1.bf16.msra.mxu0 %v1892_v7  ;;  %1859 = vmatprep.subr.bf16.mxu1 %v1858_v9  ;;  %v518_v7 = vld [vmem:[#allocation4 + $0x188] sm:$0xff]  ;;  %v1920_v9 = vpack.c.bf16 %v515_v5, %v513_v4  ;;  %v1926_v15 = vpack.c.bf16 %v524_v14, %v522_v13  ;;  %v528_v20 = vld [vmem:[#allocation4 + $0x1d8] sm:$0xff]  ;;  %v527_v23 = vld [vmem:[#allocation4 + $0x1d0] sm:$0xff] }
  0x66   :  { %1895 = vmatprep.subr.bf16.mxu0 %v1894_v12  ;;  %v1922_v10 = vpack.c.bf16 %v520_v8, %v518_v7  ;;  %v519_v12 = vld [vmem:[#allocation4 + $0x190] sm:$0xff]  ;;  %v530_v25 = vld [vmem:[#allocation4 + $0x1e8] sm:$0xff]  ;;  %v532_v26 = vld [vmem:[#allocation4 + $0x1f8] sm:$0xff] }
  0x67   :  { %v1934_v27 = vpack.c.bf16 %v532_v26, %v530_v25  ;;  %v529_v28 = vld [vmem:[#allocation4 + $0x1e0] sm:$0xff]  ;;  %v531_v29 = vld [vmem:[#allocation4 + $0x1f0] sm:$0xff]  ;;  %v640_v32 = vld [vmem:[#allocation6 + $0x88] sm:$0xff] }
  0x68   :  { %1861 = vmatpush1.bf16.msra.mxu1 %v1860_v17  ;;  %v1928_v17 = vpack.c.bf16 %v523_v6, %v521_v16  ;;  %v624_v35 = vld [vmem:[#allocation6 + $0x8] sm:$0xff]  ;;  %v642_v37 = vld [vmem:[#allocation6 + $0x98] sm:$0xff]  ;;  %v625_v40 = vld [vmem:[#allocation6 + $0x10] sm:$0xff] }
  0x69   :  { %1897 = vmatpush1.bf16.msra.mxu0 %v1896_v18  ;;  %1863 = vmatprep.subr.bf16.mxu1 %v1862_v21  ;;  %v526_v18 = vld [vmem:[#allocation4 + $0x1c8] sm:$0xff]  ;;  %v626_v41 = vld [vmem:[#allocation6 + $0x18] sm:$0xff]  ;;  %v627_v46 = vld [vmem:[#allocation6 + $0x20] sm:$0xff] }
  0x6a   :  { %1899 = vmatprep.subr.bf16.mxu0 %v1898_v24  ;;  %v1930_v21 = vpack.c.bf16 %v528_v20, %v526_v18  ;;  %v1932_v24 = vpack.c.bf16 %v527_v23, %v525_v22  ;;  %v645_v48 = vld [vmem:[#allocation6 + $0xb0] sm:$0xff]  ;;  %v646_v49 = vld [vmem:[#allocation6 + $0xb8] sm:$0xff]  ;;  %v648_v55 = vld [vmem:[#allocation6 + $0xc8] sm:$0xff] }
  0x6b   :  { %v1950_v51 = vpack.c.bf16 %v646_v49, %v645_v48  ;;  %v631_v58 = vld [vmem:[#allocation6 + $0x40] sm:$0xff]  ;;  %v650_v61 = vld [vmem:[#allocation6 + $0xd8] sm:$0xff]  ;;  %v633_v20 = vld [vmem:[#allocation6 + $0x50] sm:$0xff] }
  0x6c   :  { %1865 = vmatpush1.bf16.msra.mxu1 %v1864_v30  ;;  %v1936_v30 = vpack.c.bf16 %v531_v29, %v529_v28  ;;  %v1649_v7 = vld [vmem:[%s2506_s2 + $0x1] ss:$8 sm:$0x3]  ;;  %v653_v29 = vld [vmem:[#allocation6 + $0xf0] sm:$0xff] }
  0x6d   :  { %1901 = vmatpush1.bf16.msra.mxu0 %v1900_v31  ;;  %1867 = vmatprep.subr.bf16.mxu1 %v1866_v33  ;;  %v639_v31 = vld [vmem:[#allocation6 + $0x80] sm:$0xff] }
  0x6e   :  { %1903 = vmatprep.subr.bf16.mxu0 %v1902_v36  ;;  %v623_v33 = vld [vmem:[#allocation6] sm:$0xff]  ;;  %v1938_v34 = vpack.c.bf16 %v640_v32, %v639_v31  ;;  %v641_v36 = vld [vmem:[#allocation6 + $0x90] sm:$0xff] }
  0x6f   :  { %v1940_v38 = vpack.c.bf16 %v624_v35, %v623_v33  ;;  %v1942_v39 = vpack.c.bf16 %v642_v37, %v641_v36  ;;  %v651_v23 = vld [vmem:[#allocation6 + $0xe0] sm:$0xff]  ;;  %v637_v32 = vld [vmem:[#allocation6 + $0x70] sm:$0xff]  ;;  %v638_v33 = vld [vmem:[#allocation6 + $0x78] sm:$0xff] }
  0x70   :  { %1869 = vmatpush1.bf16.msra.mxu1 %v1868_v42  ;;  %v643_v42 = vld [vmem:[#allocation6 + $0xa0] sm:$0xff] }
  0x71   :  { %1905 = vmatpush1.bf16.msra.mxu0 %v1904_v43  ;;  %1871 = vmatprep.subr.bf16.mxu1 %v1870_v44  ;;  %v644_v43 = vld [vmem:[#allocation6 + $0xa8] sm:$0xff]  ;;  %v1944_v44 = vpack.c.bf16 %v626_v41, %v625_v40  ;;  %v635_v26 = vld [vmem:[#allocation6 + $0x60] sm:$0xff] }
  0x72   :  { %1907 = vmatprep.subr.bf16.mxu0 %v1906_v47  ;;  %v1946_v45 = vpack.c.bf16 %v644_v43, %v643_v42  ;;  %v628_v47 = vld [vmem:[#allocation6 + $0x28] sm:$0xff] }
  0x73   :  { %v1948_v50 = vpack.c.bf16 %v628_v47, %v627_v46  ;;  %v1650_v35 = vld [vmem:[%s2506_s2 + $0x2] ss:$8 sm:$0x3]  ;;  %v455_v36 = vld [vmem:[%s2506_s2] ss:$8 sm:$0x3] }
  0x74   :  { %1873 = vmatpush1.bf16.msra.mxu1 %v1872_v52  ;;  %v629_v52 = vld [vmem:[#allocation6 + $0x30] sm:$0xff] }
  0x75   :  { %1909 = vmatpush1.bf16.msra.mxu0 %v1908_v53  ;;  %1939 = vmatprep.subr.bf16.mxu1 %v1938_v34  ;;  %v630_v53 = vld [vmem:[#allocation6 + $0x38] sm:$0xff]  ;;  %v1968_v34 = vpack.c.bf16 %v638_v33, %v637_v32 }
  0x76   :  { %1911 = vmatprep.subr.bf16.mxu0 %v1910_v54  ;;  %v647_v54 = vld [vmem:[#allocation6 + $0xc0] sm:$0xff]  ;;  %v1952_v56 = vpack.c.bf16 %v630_v53, %v629_v52 }
  0x77   :  { %1648 = vmatmul.mubr.msk.f32.vlgmr.msra.gmra.mrb[2].mxu1 %vm292_vm1, %v2381_v19  ;;  %v1924_v19 = vpack.c.bf16 %v519_v12, %v517_v11  ;;  %v1954_v57 = vpack.c.bf16 %v648_v55, %v647_v54  ;;  %v727_v53 = vld [vmem:[#allocation6 + $0x100] sm:$0xff]  ;;  %v728_v54 = vld [vmem:[#allocation6 + $0x108] sm:$0xff] }
  0x78   :  { %1941 = vmatpush3.bf16.msra.mxu1 %v1940_v38  ;;  %v1971_v55 = vpack.c.bf16 %v728_v54, %v727_v53  ;;  %v914_v53 = vld [vmem:[#allocation4 + $0x2d8] sm:$0xff] }
  0x79   :  { %1913 = vmatpush1.bf16.msra.mxu0 %v1912_v59  ;;  %1943 = vmatprep.subr.bf16.mxu1 %v1942_v39  ;;  %v632_v59 = vld [vmem:[#allocation6 + $0x48] sm:$0xff] }
  0x7a   :  { %1915 = vmatprep.subr.bf16.mxu0 %v1914_v60  ;;  %v649_v60 = vld [vmem:[#allocation6 + $0xd0] sm:$0xff]  ;;  %v1956_v62 = vpack.c.bf16 %v632_v59, %v631_v58  ;;  %v730_v58 = vld [vmem:[#allocation6 + $0x118] sm:$0xff] }
  0x7b   :  { %v1958_v63 = vpack.c.bf16 %v650_v61, %v649_v60  ;;  %v655_v61 = vld [vmem:[%s2506_s2 + $0x3] ss:$0 sm:$0xff] }
  0x7c   :  { %1945 = vmatpush3.bf16.msra.mxu1 %v1944_v44 }
  0x7d   :  { %1917 = vmatpush1.bf16.msra.mxu0 %v1916_v2  ;;  %1947 = vmatprep.subr.bf16.mxu1 %v1946_v45  ;;  %v442_v2 = vshrl.u32 %v441_v1, 7 }
  0x7e   :  { %1919 = vmatprep.subr.bf16.mxu0 %v1918_v3 }
  0x7f   :  { %v2391_v4 = vsub.s32 0, %v442_v2  ;;  %v2396_v8 = vsub.s32 1, %v442_v2 }
  0x80   :  { %1949 = vmatpush3.bf16.msra.mxu1 %v1948_v50 }
  0x81   :  { %1921 = vmatpush1.bf16.msra.mxu0 %v1920_v9  ;;  %1951 = vmatprep.subr.bf16.mxu1 %v1950_v51  ;;  %v444_v9 = vrot.slane %v1649_v7, %v2391_v4  ;;  %v448_v11 = vrot.slane %v1649_v7, %v2396_v8  ;;  %v539_v37 = vrot.slane %v1650_v35, %v2391_v4 }
  0x82   :  { %1923 = vmatprep.subr.bf16.mxu0 %v1922_v10  ;;  %v543_v38 = vrot.slane %v1650_v35, %v2396_v8  ;;  %v460_v39 = vrot.slane %v455_v36, %v2391_v4  ;;  %v464_v40 = vrot.slane %v455_v36, %v2396_v8  ;;  %v901_v35 = vld [vmem:[#allocation4 + $0x270] sm:$0xff]  ;;  %v904_v36 = vld [vmem:[#allocation4 + $0x288] sm:$0xff] }
  0x84   :  { %1953 = vmatpush3.bf16.msra.mxu1 %v1952_v56  ;;  %v2295_v56 = vmov 0.0|0.0  }
  0x85   :  { %1925 = vmatpush1.bf16.msra.mxu0 %v1924_v19  ;;  %1955 = vmatprep.subr.bf16.mxu1 %v1954_v57  ;;  %v729_v57 = vld [vmem:[#allocation6 + $0x110] sm:$0xff] }
  0x86   :  { %1927 = vmatprep.subr.bf16.mxu0 %v1926_v15  ;;  %v1974_v59 = vpack.c.bf16 %v730_v58, %v729_v57  ;;  %v911_v57 = vld [vmem:[#allocation4 + $0x2c0] sm:$0xff]  ;;  %v913_v58 = vld [vmem:[#allocation4 + $0x2d0] sm:$0xff] }
  0x88   :  { %1957 = vmatpush3.bf16.msra.mxu1 %v1956_v62 }
  0x89   :  { %1929 = vmatpush1.bf16.msra.mxu0 %v1928_v17  ;;  %1959 = vmatprep.subr.bf16.mxu1 %v1958_v63 }
  0x8a   :  { %1931 = vmatprep.subr.bf16.mxu0 %v1930_v21  ;;  %v634_v21 = vld [vmem:[#allocation6 + $0x58] sm:$0xff] }
  0x8b   :  { %v1960_v22 = vpack.c.bf16 %v634_v21, %v633_v20  ;;  %v893_v20 = vld [vmem:[#allocation4 + $0x230] sm:$0xff] }
  0x8d   :  { %1933 = vmatpush1.bf16.msra.mxu0 %v1932_v24  ;;  %1961 = vmatpush3.bf16.msra.mxu1 %v1960_v22  ;;  %v652_v24 = vld [vmem:[#allocation6 + $0xe8] sm:$0xff] }
  0x8e   :  { %1935 = vmatprep.subr.bf16.mxu0 %v1934_v27  ;;  %v1962_v25 = vpack.c.bf16 %v652_v24, %v651_v23  ;;  %v636_v27 = vld [vmem:[#allocation6 + $0x68] sm:$0xff]  ;;  %v898_v23 = vld [vmem:[#allocation4 + $0x258] sm:$0xff] }
  0x8f   :  { %v1964_v28 = vpack.c.bf16 %v636_v27, %v635_v26  ;;  %v896_v22 = vld [vmem:[#allocation4 + $0x248] sm:$0xff] }
  0x90   :  { %1963 = vmatprep.subr.bf16.mxu1 %v1962_v25  ;;  %v1984_v27 = vpack.c.bf16 %v898_v23, %v896_v22  ;;  %v932_v22 = vld [vmem:[#allocation4 + $0x368] sm:$0xff]  ;;  %v934_v23 = vld [vmem:[#allocation4 + $0x378] sm:$0xff] }
  0x91   :  { %1937 = vmatpush1.bf16.msra.mxu0 %v1936_v30  ;;  %1965 = vmatpush3.bf16.msra.mxu1 %v1964_v28  ;;  %v654_v30 = vld [vmem:[#allocation6 + $0xf8] sm:$0xff]  ;;  %v895_v28 = vld [vmem:[#allocation4 + $0x240] sm:$0xff] }
  0x92   :  { %v1966_v31 = vpack.c.bf16 %v654_v30, %v653_v29  ;;  %v897_v29 = vld [vmem:[#allocation4 + $0x250] sm:$0xff]  ;;  %v900_v30 = vld [vmem:[#allocation4 + $0x268] sm:$0xff] }
  0x93   :  { %v1986_v32 = vpack.c.bf16 %v897_v29, %v895_v28  ;;  %v936_v28 = vld [vmem:[#allocation4 + $0x388] sm:$0xff]  ;;  %v938_v29 = vld [vmem:[#allocation4 + $0x398] sm:$0xff] }
  0x94   :  { %1967 = vmatprep.subr.bf16.mxu1 %v1966_v31  ;;  %v902_v31 = vld [vmem:[#allocation4 + $0x278] sm:$0xff] }
  0x95   :  { %1969 = vmatpush3.bf16.msra.mxu1 %v1968_v34  ;;  %v1988_v33 = vpack.c.bf16 %v902_v31, %v900_v30  ;;  %v899_v34 = vld [vmem:[#allocation4 + $0x260] sm:$0xff]  ;;  %v2024_v31 = vpack.c.bf16 %v938_v29, %v936_v28 }
  0x96   :  { %1970 = vmatprep.subr.bf16.mxu1 %v2295_v56 }
 0x122   :  { %v216_v3 = vpop.f32.mrb[0].mxu1 }
 0x123   :  { %v218_v5 = vpop.f32.mrb[1].mxu1 }
 0x127   :  { %v362_v10 = vpop.f32.mrb[0].mxu0 }
 0x128   :  { %v363_v12 = vadd.f32 %v362_v10, %v216_v3  ;;  %v364_v13 = vpop.f32.mrb[1].mxu0  ;;  %v811_v3 = vld [vmem:[#allocation4 + $0x208] sm:$0xff]  ;;  %v812_v10 = vld [vmem:[#allocation4 + $0x210] sm:$0xff] }
 0x129   :  { %v365_v14 = vadd.f32 %v364_v13, %v218_v5  ;;  %v813_v5 = vld [vmem:[#allocation4 + $0x218] sm:$0xff] }
 0x12a   :  { %v451_v19 = vadd.f32 %v444_v9, %v363_v12  ;;  %v1976_v7 = vpack.c.bf16 %v813_v5, %v811_v3  ;;  %v810_v9 = vld [vmem:[#allocation4 + $0x200] sm:$0xff]  ;;  %v892_v12 = vld [vmem:[#allocation4 + $0x228] sm:$0xff]  ;;  %v894_v13 = vld [vmem:[#allocation4 + $0x238] sm:$0xff] }
 0x12b   :  { %v452_v15 = vadd.f32 %v448_v11, %v365_v14  ;;  %v1978_v11 = vpack.c.bf16 %v812_v10, %v810_v9  ;;  %v1980_v14 = vpack.c.bf16 %v894_v13, %v892_v12  ;;  %v922_v3 = vld [vmem:[#allocation4 + $0x318] sm:$0xff]  ;;  %v919_v9 = vld [vmem:[#allocation4 + $0x300] sm:$0xff]  ;;  %v921_v10 = vld [vmem:[#allocation4 + $0x310] sm:$0xff] }
 0x12c   :  { %v453_v6 = vmax.f32 %v451_v19, 0.0  ;;  %v731_v19 = vld [vmem:[%s2506_s2 + $0x4] ss:$0 sm:$0xff]  ;;  %v926_v12 = vld [vmem:[#allocation4 + $0x338] sm:$0xff]  ;;  %v2010_v13 = vpack.c.bf16 %v921_v10, %v919_v9  ;;  %v1046_v9 = vld [vmem:[#allocation4 + $0x448] sm:$0xff] }
 0x12d   :  { %v454_v16 = vmax.f32 %v452_v15, 0.0  ;;  %v1048_v10 = vld [vmem:[#allocation4 + $0x458] sm:$0xff] }
 0x12f   :  { %610 = vmatprep.mubr.f32.mxu0 %v454_v16 }
 0x130   :  { %611 = vmatmul.mubr.f32.vlgmr.msra.gmra.mrb[2].mxu0 %v453_v6 }
 0x14a   :  { %v433_v17 = vpop.f32.mrb[2].mxu1 }
 0x14b   :  { %v435_v18 = vpop.f32.mrb[3].mxu1  ;;  %v467_v45 = vadd.f32 %v460_v39, %v433_v17 }
 0x14c   :  { %v468_v47 = vadd.f32 %v464_v40, %v435_v18  ;;  %v891_v18 = vld [vmem:[#allocation4 + $0x220] sm:$0xff] }
 0x14d   :  { %v1982_v25 = vpack.c.bf16 %v893_v20, %v891_v18  ;;  %v903_v40 = vld [vmem:[#allocation4 + $0x280] sm:$0xff] }
 0x14e   :  { %v927_v20 = vld [vmem:[#allocation4 + $0x340] sm:$0xff] }
 0x203   :  { %v612_v41 = vpop.f32.mrb[2].mxu0 }
 0x204   :  { %v613_v42 = vadd.f32 %v612_v41, %v539_v37  ;;  %v614_v43 = vpop.f32.mrb[3].mxu0  ;;  %v906_v37 = vld [vmem:[#allocation4 + $0x298] sm:$0xff]  ;;  %v905_v41 = vld [vmem:[#allocation4 + $0x290] sm:$0xff] }
 0x205   :  { %v615_v44 = vadd.f32 %v614_v43, %v543_v38  ;;  %v1990_v38 = vpack.c.bf16 %v901_v35, %v899_v34  ;;  %v1992_v39 = vpack.c.bf16 %v906_v37, %v904_v36  ;;  %v910_v43 = vld [vmem:[#allocation4 + $0x2b8] sm:$0xff]  ;;  %v940_v34 = vld [vmem:[#allocation4 + $0x3a8] sm:$0xff] }
 0x206   :  { %v617_v46 = vmax.f32 %v613_v42, 0.0  ;;  %v908_v42 = vld [vmem:[#allocation4 + $0x2a8] sm:$0xff]  ;;  %v942_v35 = vld [vmem:[#allocation4 + $0x3b8] sm:$0xff] }
 0x207   :  { %v618_v48 = vmax.f32 %v615_v44, 0.0  ;;  %v1994_v44 = vpack.c.bf16 %v905_v41, %v903_v40  ;;  %v2028_v37 = vpack.c.bf16 %v942_v35, %v940_v34  ;;  %v944_v40 = vld [vmem:[#allocation4 + $0x3c8] sm:$0xff]  ;;  %v946_v41 = vld [vmem:[#allocation4 + $0x3d8] sm:$0xff] }
 0x208   :  { %v2410_v49 = vadd.f32 %v617_v46, %v467_v45  ;;  %v1996_v45 = vpack.c.bf16 %v910_v43, %v908_v42  ;;  %v907_v46 = vld [vmem:[#allocation4 + $0x2a0] sm:$0xff]  ;;  %v2032_v43 = vpack.c.bf16 %v946_v41, %v944_v40 }
 0x209   :  { %v2412_v50 = vadd.f32 %v618_v48, %v468_v47  ;;  %v909_v47 = vld [vmem:[#allocation4 + $0x2b0] sm:$0xff]  ;;  %v912_v48 = vld [vmem:[#allocation4 + $0x2c8] sm:$0xff] }
 0x20a   :  { %v621_v52 = vmax.f32 %v2410_v49, 0.0  ;;  %v1998_v54 = vpack.c.bf16 %v909_v47, %v907_v46  ;;  %v948_v46 = vld [vmem:[#allocation4 + $0x3e8] sm:$0xff]  ;;  %v950_v47 = vld [vmem:[#allocation4 + $0x3f8] sm:$0xff]  ;;  %v1211_v49 = vld [vmem:[#allocation6 + $0x1a0] sm:$0xff] }
 0x20b   :  { %v622_v51 = vmax.f32 %v2412_v50, 0.0 }
 0x20d   :  { %720 = vmatprep.mubr.f32.mxu1 %v622_v51 }
 0x20e   :  { %721 = vmatmul.mubr.f32.vlgmr.msra.gmra.mrb[4].mxu1 %v621_v52 }
 0x20f   :  { %1972 = vmatpush3.bf16.msra.mxu1 %v1971_v55  ;;  %1780 = vmatprep.mubr.msk.f32.mxu1 %vm2296_vm2, %v2294_v0  ;;  %v2000_v55 = vpack.c.bf16 %v914_v53, %v912_v48  ;;  %v2036_v53 = vpack.c.bf16 %v950_v47, %v948_v46 }
 0x210   :  { %1973 = vmatprep.subr.bf16.mxu1 %v2295_v56 }
 0x213   :  { %1975 = vmatpush3.bf16.msra.mxu1 %v1974_v59  ;;  %v916_v59 = vld [vmem:[#allocation4 + $0x2e8] sm:$0xff] }
 0x214   :  { %1977 = vmatprep.subr.bf16.mxu1 %v1976_v7 }
 0x2e1   :  { %v1689_v60 = vpop.f32.mrb[4].mxu1 }
 0x2e2   :  { %v1690_v62 = vpop.f32.mrb[5].mxu1 }
 0x2e3   :  { %v1691_v63 = vadd.f32 %v1690_v62, %v1689_v60  ;;  %v918_v60 = vld [vmem:[#allocation4 + $0x2f8] sm:$0xff] }
 0x2e4   :  { %v2004_v62 = vpack.c.bf16 %v918_v60, %v916_v59  ;;  %v954_v59 = vld [vmem:[#allocation4 + $0x418] sm:$0xff] }
 0x2e5   :  { %v723_v1 = vadd.f32 %v1691_v63, %v655_v61  ;;  %v2002_v61 = vpack.c.bf16 %v913_v58, %v911_v57  ;;  %v915_v63 = vld [vmem:[#allocation4 + $0x2e0] sm:$0xff]  ;;  %v952_v58 = vld [vmem:[#allocation4 + $0x408] sm:$0xff] }
 0x2e6   :  { %v2040_v60 = vpack.c.bf16 %v954_v59, %v952_v58  ;;  %v1073_v59 = vld [vmem:[#allocation4 + $0x520] sm:$0xff] }
 0x2e7   :  { %v726_v2 = vmax.f32 %v723_v1, 0.0  ;;  %v917_v1 = vld [vmem:[#allocation4 + $0x2f0] sm:$0xff] }
 0x2e8   :  { %v2006_v5 = vpack.c.bf16 %v917_v1, %v915_v63  ;;  %v1042_v1 = vld [vmem:[#allocation4 + $0x428] sm:$0xff] }
 0x2e9   :  { %1781 = vmatmul.mubr.msk.f32.vlgmr.msra.gmra.mrb[6].mxu1 %vm732_vm3, %v726_v2  ;;  %v920_v2 = vld [vmem:[#allocation4 + $0x308] sm:$0xff] }
 0x2ea   :  { %882 = vmatprep.mubr.f32.mxu1 %v2294_v0  ;;  %1979 = vmatpush1.bf16.msra.mxu1 %v1978_v11  ;;  %v2008_v7 = vpack.c.bf16 %v922_v3, %v920_v2  ;;  %v924_v11 = vld [vmem:[#allocation4 + $0x328] sm:$0xff]  ;;  %v1044_v2 = vld [vmem:[#allocation4 + $0x438] sm:$0xff]  ;;  %v1041_v3 = vld [vmem:[#allocation4 + $0x420] sm:$0xff] }
 0x2eb   :  { %1981 = vmatprep.subr.bf16.mxu1 %v1980_v14  ;;  %v2012_v14 = vpack.c.bf16 %v926_v12, %v924_v11  ;;  %v2048_v12 = vpack.c.bf16 %v1048_v10, %v1046_v9 }
 0x3bc   :  { %v802_v15 = vpop.f32.mrb[6].mxu1 }
 0x3bd   :  { %v803_v16 = vadd.f32 %v802_v15, %v731_v19  ;;  %v1782_v6 = vpop.f32.mrb[7].mxu1  ;;  %v923_v19 = vld [vmem:[#allocation4 + $0x320] sm:$0xff]  ;;  %v925_v15 = vld [vmem:[#allocation4 + $0x330] sm:$0xff] }
 0x3be   :  { %v930_v6 = vld [vmem:[#allocation4 + $0x358] sm:$0xff] }
 0x3bf   :  { %v806_v17 = vmul.f32 0.5, %v803_v16  ;;  %v928_v16 = vld [vmem:[#allocation4 + $0x348] sm:$0xff] }
 0x3c0   :  { %v2016_v18 = vpack.c.bf16 %v930_v6, %v928_v16 }
 0x3c1   :  { %2199 = vtanh.f32 %v806_v17  ;;  %v2014_v17 = vpack.c.bf16 %v925_v15, %v923_v19  ;;  %v1050_v19 = vld [vmem:[#allocation4 + $0x468] sm:$0xff]  ;;  %v1052_v15 = vld [vmem:[#allocation4 + $0x478] sm:$0xff] }
 0x3c2   :  { %v2052_v6 = vpack.c.bf16 %v1052_v15, %v1050_v19 }
 0x3cb   :  { %v2200_v21 = vpop.eup %2199 }
 0x3cc   :  { %v808_v24 = vmul.f32 0.5, %v2200_v21  ;;  %v929_v21 = vld [vmem:[#allocation4 + $0x350] sm:$0xff] }
 0x3ce   :  { %v809_v26 = vadd.f32 0.5, %v808_v24  ;;  %v2018_v24 = vpack.c.bf16 %v929_v21, %v927_v20  ;;  %v1054_v20 = vld [vmem:[#allocation4 + $0x488] sm:$0xff]  ;;  %v1056_v21 = vld [vmem:[#allocation4 + $0x498] sm:$0xff] }
 0x3d0   :  { %1652 = vmatmul.mubr.msk.f32.vlgmr.msra.gmra.mrb[8].mxu1 %vm814_vm4, %v809_v26  ;;  %v931_v26 = vld [vmem:[#allocation4 + $0x360] sm:$0xff] }
 0x3d1   :  { %1983 = vmatpush1.bf16.msra.mxu1 %v1982_v25  ;;  %v2020_v25 = vpack.c.bf16 %v934_v23, %v932_v22  ;;  %v2056_v23 = vpack.c.bf16 %v1056_v21, %v1054_v20 }
 0x3d2   :  { %1985 = vmatprep.subr.bf16.mxu1 %v1984_v27  ;;  %v933_v27 = vld [vmem:[#allocation4 + $0x370] sm:$0xff] }
 0x3d3   :  { %v2022_v30 = vpack.c.bf16 %v933_v27, %v931_v26  ;;  %v1058_v26 = vld [vmem:[#allocation4 + $0x4a8] sm:$0xff]  ;;  %v1060_v27 = vld [vmem:[#allocation4 + $0x4b8] sm:$0xff] }
 0x3d4   :  { %v2060_v29 = vpack.c.bf16 %v1060_v27, %v1058_v26 }
 0x3d5   :  { %1987 = vmatpush1.bf16.msra.mxu1 %v1986_v32  ;;  %v935_v32 = vld [vmem:[#allocation4 + $0x380] sm:$0xff] }
 0x3d6   :  { %1989 = vmatprep.subr.bf16.mxu1 %v1988_v33  ;;  %v937_v33 = vld [vmem:[#allocation4 + $0x390] sm:$0xff] }
 0x3d7   :  { %v2026_v36 = vpack.c.bf16 %v937_v33, %v935_v32  ;;  %v1062_v32 = vld [vmem:[#allocation4 + $0x4c8] sm:$0xff]  ;;  %v1064_v33 = vld [vmem:[#allocation4 + $0x4d8] sm:$0xff] }
 0x3d8   :  { %v2064_v35 = vpack.c.bf16 %v1064_v33, %v1062_v32 }
 0x3d9   :  { %1991 = vmatpush1.bf16.msra.mxu1 %v1990_v38  ;;  %v939_v38 = vld [vmem:[#allocation4 + $0x3a0] sm:$0xff] }
 0x3da   :  { %1993 = vmatprep.subr.bf16.mxu1 %v1992_v39  ;;  %v941_v39 = vld [vmem:[#allocation4 + $0x3b0] sm:$0xff] }
 0x3db   :  { %v2030_v42 = vpack.c.bf16 %v941_v39, %v939_v38  ;;  %v1066_v38 = vld [vmem:[#allocation4 + $0x4e8] sm:$0xff]  ;;  %v1068_v39 = vld [vmem:[#allocation4 + $0x4f8] sm:$0xff] }
 0x3dc   :  { %v2068_v41 = vpack.c.bf16 %v1068_v39, %v1066_v38  ;;  %v1097_v38 = vld [vmem:[#allocation4 + $0x5e0] sm:$0xff]  ;;  %v1099_v39 = vld [vmem:[#allocation4 + $0x5f0] sm:$0xff] }
 0x3dd   :  { %1995 = vmatpush1.bf16.msra.mxu1 %v1994_v44  ;;  %v943_v44 = vld [vmem:[#allocation4 + $0x3c0] sm:$0xff] }
 0x3de   :  { %1997 = vmatprep.subr.bf16.mxu1 %v1996_v45  ;;  %v945_v45 = vld [vmem:[#allocation4 + $0x3d0] sm:$0xff] }
 0x3df   :  { %v2034_v48 = vpack.c.bf16 %v945_v45, %v943_v44  ;;  %v1070_v44 = vld [vmem:[#allocation4 + $0x508] sm:$0xff]  ;;  %v1072_v45 = vld [vmem:[#allocation4 + $0x518] sm:$0xff] }
 0x3e0   :  { %v2072_v47 = vpack.c.bf16 %v1072_v45, %v1070_v44  ;;  %v1101_v44 = vld [vmem:[#allocation4 + $0x600] sm:$0xff]  ;;  %v1103_v45 = vld [vmem:[#allocation4 + $0x610] sm:$0xff] }
 0x3e1   :  { %1999 = vmatpush1.bf16.msra.mxu1 %v1998_v54  ;;  %v947_v54 = vld [vmem:[#allocation4 + $0x3e0] sm:$0xff]  ;;  %v2106_v50 = vpack.c.bf16 %v1103_v45, %v1101_v44  ;;  %v1210_v44 = vld [vmem:[#allocation6 + $0x198] sm:$0xff] }
 0x3e2   :  { %2001 = vmatprep.subr.bf16.mxu1 %v2000_v55  ;;  %v949_v55 = vld [vmem:[#allocation4 + $0x3f0] sm:$0xff] }
 0x3e3   :  { %v2038_v57 = vpack.c.bf16 %v949_v55, %v947_v54  ;;  %v1074_v54 = vld [vmem:[#allocation4 + $0x528] sm:$0xff]  ;;  %v1076_v55 = vld [vmem:[#allocation4 + $0x538] sm:$0xff] }
 0x3e4   :  { %v2076_v58 = vpack.c.bf16 %v1076_v55, %v1074_v54 }
 0x3e5   :  { %2003 = vmatpush1.bf16.msra.mxu1 %v2002_v61  ;;  %v951_v61 = vld [vmem:[#allocation4 + $0x400] sm:$0xff] }
 0x3e6   :  { %2005 = vmatprep.subr.bf16.mxu1 %v2004_v62  ;;  %v953_v62 = vld [vmem:[#allocation4 + $0x410] sm:$0xff] }
 0x3e7   :  { %v2042_v63 = vpack.c.bf16 %v953_v62, %v951_v61  ;;  %v1078_v61 = vld [vmem:[#allocation4 + $0x548] sm:$0xff]  ;;  %v1080_v62 = vld [vmem:[#allocation4 + $0x558] sm:$0xff] }
 0x3e9   :  { %2007 = vmatpush1.bf16.msra.mxu1 %v2006_v5  ;;  %v2044_v5 = vpack.c.bf16 %v1044_v2, %v1042_v1  ;;  %v2080_v1 = vpack.c.bf16 %v1080_v62, %v1078_v61  ;;  %v1077_v2 = vld [vmem:[#allocation4 + $0x540] sm:$0xff] }
 0x3ea   :  { %2009 = vmatprep.subr.bf16.mxu1 %v2008_v7  ;;  %v1043_v7 = vld [vmem:[#allocation4 + $0x430] sm:$0xff] }
 0x3eb   :  { %v2046_v11 = vpack.c.bf16 %v1043_v7, %v1041_v3  ;;  %2045 = vmatprep.subr.bf16.mxu0 %v2044_v5  ;;  %v1079_v3 = vld [vmem:[#allocation4 + $0x550] sm:$0xff]  ;;  %v1082_v5 = vld [vmem:[#allocation4 + $0x568] sm:$0xff]  ;;  %v1084_v7 = vld [vmem:[#allocation4 + $0x578] sm:$0xff] }
 0x3ec   :  { %v2082_v9 = vpack.c.bf16 %v1079_v3, %v1077_v2  ;;  %v2084_v10 = vpack.c.bf16 %v1084_v7, %v1082_v5  ;;  %v1217_v2 = vld [vmem:[#allocation6 + $0x1d0] sm:$0xff]  ;;  %v1218_v3 = vld [vmem:[#allocation6 + $0x1d8] sm:$0xff] }
 0x3ed   :  { %2011 = vmatpush1.bf16.msra.mxu1 %v2010_v13  ;;  %v1045_v13 = vld [vmem:[#allocation4 + $0x440] sm:$0xff]  ;;  %2047 = vmatpush1.bf16.msra.mxu0 %v2046_v11  ;;  %v2120_v7 = vpack.c.bf16 %v1218_v3, %v1217_v2 }
 0x3ee   :  { %2013 = vmatprep.subr.bf16.mxu1 %v2012_v14  ;;  %v1047_v14 = vld [vmem:[#allocation4 + $0x450] sm:$0xff]  ;;  %2049 = vmatprep.subr.bf16.mxu0 %v2048_v12  ;;  %v1081_v11 = vld [vmem:[#allocation4 + $0x560] sm:$0xff] }
 0x3ef   :  { %v2050_v16 = vpack.c.bf16 %v1047_v14, %v1045_v13  ;;  %v1083_v12 = vld [vmem:[#allocation4 + $0x570] sm:$0xff]  ;;  %v1086_v13 = vld [vmem:[#allocation4 + $0x588] sm:$0xff]  ;;  %v1088_v14 = vld [vmem:[#allocation4 + $0x598] sm:$0xff] }
 0x3f0   :  { %v2086_v19 = vpack.c.bf16 %v1083_v12, %v1081_v11  ;;  %v2088_v15 = vpack.c.bf16 %v1088_v14, %v1086_v13  ;;  %v1219_v11 = vld [vmem:[#allocation6 + $0x1e0] sm:$0xff]  ;;  %v1220_v12 = vld [vmem:[#allocation6 + $0x1e8] sm:$0xff] }
 0x3f1   :  { %2015 = vmatpush1.bf16.msra.mxu1 %v2014_v17  ;;  %v1049_v17 = vld [vmem:[#allocation4 + $0x460] sm:$0xff]  ;;  %2051 = vmatpush1.bf16.msra.mxu0 %v2050_v16  ;;  %v2124_v14 = vpack.c.bf16 %v1220_v12, %v1219_v11  ;;  %v1383_v11 = vld [vmem:[#allocation4 + $0x630] sm:$0xff] }
 0x3f2   :  { %2017 = vmatprep.subr.bf16.mxu1 %v2016_v18  ;;  %v1051_v18 = vld [vmem:[#allocation4 + $0x470] sm:$0xff]  ;;  %2053 = vmatprep.subr.bf16.mxu0 %v2052_v6  ;;  %v1085_v16 = vld [vmem:[#allocation4 + $0x580] sm:$0xff] }
 0x3f3   :  { %v2054_v22 = vpack.c.bf16 %v1051_v18, %v1049_v17  ;;  %v1087_v6 = vld [vmem:[#allocation4 + $0x590] sm:$0xff]  ;;  %v1090_v17 = vld [vmem:[#allocation4 + $0x5a8] sm:$0xff]  ;;  %v1092_v18 = vld [vmem:[#allocation4 + $0x5b8] sm:$0xff] }
 0x3f4   :  { %v2090_v20 = vpack.c.bf16 %v1087_v6, %v1085_v16  ;;  %v2092_v21 = vpack.c.bf16 %v1092_v18, %v1090_v17  ;;  %v1221_v16 = vld [vmem:[#allocation6 + $0x1f0] sm:$0xff]  ;;  %v1222_v6 = vld [vmem:[#allocation6 + $0x1f8] sm:$0xff] }
 0x3f5   :  { %2019 = vmatpush1.bf16.msra.mxu1 %v2018_v24  ;;  %v1053_v24 = vld [vmem:[#allocation4 + $0x480] sm:$0xff]  ;;  %2055 = vmatpush1.bf16.msra.mxu0 %v2054_v22  ;;  %v2128_v18 = vpack.c.bf16 %v1222_v6, %v1221_v16 }
 0x3f6   :  { %2021 = vmatprep.subr.bf16.mxu1 %v2020_v25  ;;  %v1055_v25 = vld [vmem:[#allocation4 + $0x490] sm:$0xff]  ;;  %2057 = vmatprep.subr.bf16.mxu0 %v2056_v23  ;;  %v1089_v22 = vld [vmem:[#allocation4 + $0x5a0] sm:$0xff] }
 0x3f7   :  { %v2058_v28 = vpack.c.bf16 %v1055_v25, %v1053_v24  ;;  %v1091_v23 = vld [vmem:[#allocation4 + $0x5b0] sm:$0xff]  ;;  %v1094_v24 = vld [vmem:[#allocation4 + $0x5c8] sm:$0xff]  ;;  %v1096_v25 = vld [vmem:[#allocation4 + $0x5d8] sm:$0xff] }
 0x3f8   :  { %v2094_v26 = vpack.c.bf16 %v1091_v23, %v1089_v22  ;;  %v2096_v27 = vpack.c.bf16 %v1096_v25, %v1094_v24 }
 0x3f9   :  { %2023 = vmatpush1.bf16.msra.mxu1 %v2022_v30  ;;  %v1057_v30 = vld [vmem:[#allocation4 + $0x4a0] sm:$0xff]  ;;  %2059 = vmatpush1.bf16.msra.mxu0 %v2058_v28 }
 0x3fa   :  { %2025 = vmatprep.subr.bf16.mxu1 %v2024_v31  ;;  %v1059_v31 = vld [vmem:[#allocation4 + $0x4b0] sm:$0xff]  ;;  %2061 = vmatprep.subr.bf16.mxu0 %v2060_v29  ;;  %v1093_v28 = vld [vmem:[#allocation4 + $0x5c0] sm:$0xff] }
 0x3fb   :  { %v2062_v34 = vpack.c.bf16 %v1059_v31, %v1057_v30  ;;  %v1095_v29 = vld [vmem:[#allocation4 + $0x5d0] sm:$0xff]  ;;  %v1098_v30 = vld [vmem:[#allocation4 + $0x5e8] sm:$0xff]  ;;  %v1100_v31 = vld [vmem:[#allocation4 + $0x5f8] sm:$0xff] }
 0x3fc   :  { %v2098_v32 = vpack.c.bf16 %v1095_v29, %v1093_v28  ;;  %v2100_v33 = vpack.c.bf16 %v1100_v31, %v1098_v30  ;;  %v1205_v29 = vld [vmem:[#allocation6 + $0x170] sm:$0xff]  ;;  %v1206_v30 = vld [vmem:[#allocation6 + $0x178] sm:$0xff] }
 0x3fd   :  { %2027 = vmatpush1.bf16.msra.mxu1 %v2026_v36  ;;  %v1061_v36 = vld [vmem:[#allocation4 + $0x4c0] sm:$0xff]  ;;  %2063 = vmatpush1.bf16.msra.mxu0 %v2062_v34  ;;  %v2130_v31 = vpack.c.bf16 %v1206_v30, %v1205_v29  ;;  %v1464_v29 = vld [vmem:[#allocation6 + $0x258] sm:$0xff] }
 0x3fe   :  { %2029 = vmatprep.subr.bf16.mxu1 %v2028_v37  ;;  %v1063_v37 = vld [vmem:[#allocation4 + $0x4d0] sm:$0xff]  ;;  %2065 = vmatprep.subr.bf16.mxu0 %v2064_v35  ;;  %v1481_v30 = vld [vmem:[#allocation6 + $0x2e0] sm:$0xff] }
 0x3ff   :  { %v2066_v40 = vpack.c.bf16 %v1063_v37, %v1061_v36 }
 0x401   :  { %2031 = vmatpush1.bf16.msra.mxu1 %v2030_v42  ;;  %v1065_v42 = vld [vmem:[#allocation4 + $0x4e0] sm:$0xff]  ;;  %2067 = vmatpush1.bf16.msra.mxu0 %v2066_v40  ;;  %v2102_v40 = vpack.c.bf16 %v1099_v39, %v1097_v38  ;;  %v1208_v38 = vld [vmem:[#allocation6 + $0x188] sm:$0xff] }
 0x402   :  { %2033 = vmatprep.subr.bf16.mxu1 %v2032_v43  ;;  %v1067_v43 = vld [vmem:[#allocation4 + $0x4f0] sm:$0xff]  ;;  %2069 = vmatprep.subr.bf16.mxu0 %v2068_v41  ;;  %v1102_v41 = vld [vmem:[#allocation4 + $0x608] sm:$0xff] }
 0x403   :  { %v2070_v46 = vpack.c.bf16 %v1067_v43, %v1065_v42  ;;  %v1104_v42 = vld [vmem:[#allocation4 + $0x618] sm:$0xff] }
 0x404   :  { %v2104_v43 = vpack.c.bf16 %v1104_v42, %v1102_v41  ;;  %v1226_v41 = vld [vmem:[#allocation6 + $0x218] sm:$0xff] }
 0x405   :  { %2035 = vmatpush1.bf16.msra.mxu1 %v2034_v48  ;;  %v1069_v48 = vld [vmem:[#allocation4 + $0x500] sm:$0xff]  ;;  %2071 = vmatpush1.bf16.msra.mxu0 %v2070_v46 }
 0x406   :  { %2037 = vmatprep.subr.bf16.mxu1 %v2036_v53  ;;  %v1071_v53 = vld [vmem:[#allocation4 + $0x510] sm:$0xff]  ;;  %2073 = vmatprep.subr.bf16.mxu0 %v2072_v47  ;;  %v1196_v47 = vld [vmem:[#allocation6 + $0x128] sm:$0xff] }
 0x409   :  { %2039 = vmatpush1.bf16.msra.mxu1 %v2038_v57  ;;  %v2074_v57 = vpack.c.bf16 %v1071_v53, %v1069_v48  ;;  %v1213_v48 = vld [vmem:[#allocation6 + $0x1b0] sm:$0xff]  ;;  %v1214_v53 = vld [vmem:[#allocation6 + $0x1b8] sm:$0xff] }
 0x40a   :  { %2041 = vmatprep.subr.bf16.mxu1 %v2040_v60  ;;  %v1075_v60 = vld [vmem:[#allocation4 + $0x530] sm:$0xff]  ;;  %v2112_v55 = vpack.c.bf16 %v1214_v53, %v1213_v48 }
 0x40b   :  { %2075 = vmatpush1.bf16.msra.mxu0 %v2074_v57  ;;  %v1197_v57 = vld [vmem:[#allocation6 + $0x130] sm:$0xff] }
 0x40c   :  { %2077 = vmatprep.subr.bf16.mxu0 %v2076_v58  ;;  %v1198_v58 = vld [vmem:[#allocation6 + $0x138] sm:$0xff] }
 0x40d   :  { %2043 = vmatpush1.bf16.msra.mxu1 %v2042_v63  ;;  %v2078_v63 = vpack.c.bf16 %v1075_v60, %v1073_v59  ;;  %v1215_v59 = vld [vmem:[#allocation6 + $0x1c0] sm:$0xff]  ;;  %v1216_v60 = vld [vmem:[#allocation6 + $0x1c8] sm:$0xff]  ;;  %v2114_v61 = vpack.c.bf16 %v1198_v58, %v1197_v57 }
 0x40e   :  { %v2116_v62 = vpack.c.bf16 %v1216_v60, %v1215_v59 }
 0x40f   :  { %2079 = vmatpush1.bf16.msra.mxu0 %v2078_v63  ;;  %v1199_v63 = vld [vmem:[#allocation6 + $0x140] sm:$0xff] }
 0x410   :  { %2081 = vmatprep.subr.bf16.mxu0 %v2080_v1  ;;  %v1200_v1 = vld [vmem:[#allocation6 + $0x148] sm:$0xff] }
 0x411   :  { %v2118_v5 = vpack.c.bf16 %v1200_v1, %v1199_v63  ;;  %v1227_v63 = vld [vmem:[%s2506_s2 + $0x7] ss:$0 sm:$0xff] }
 0x413   :  { %2083 = vmatpush1.bf16.msra.mxu0 %v2082_v9  ;;  %v1201_v9 = vld [vmem:[#allocation6 + $0x150] sm:$0xff] }
 0x414   :  { %2085 = vmatprep.subr.bf16.mxu0 %v2084_v10  ;;  %v1202_v10 = vld [vmem:[#allocation6 + $0x158] sm:$0xff] }
 0x415   :  { %v2122_v13 = vpack.c.bf16 %v1202_v10, %v1201_v9  ;;  %v1384_v9 = vld [vmem:[#allocation4 + $0x638] sm:$0xff]  ;;  %v1381_v10 = vld [vmem:[#allocation4 + $0x620] sm:$0xff] }
 0x416   :  { %v2148_v12 = vpack.c.bf16 %v1383_v11, %v1381_v10 }
 0x417   :  { %2087 = vmatpush1.bf16.msra.mxu0 %v2086_v19  ;;  %v1203_v19 = vld [vmem:[#allocation6 + $0x160] sm:$0xff] }
 0x418   :  { %2089 = vmatprep.subr.bf16.mxu0 %v2088_v15  ;;  %v1204_v15 = vld [vmem:[#allocation6 + $0x168] sm:$0xff] }
 0x419   :  { %v2126_v17 = vpack.c.bf16 %v1204_v15, %v1203_v19  ;;  %v1303_v15 = vld [vmem:[%s2506_s2 + $0x10] ss:$0 sm:$0xff] }
 0x41b   :  { %2091 = vmatpush1.bf16.msra.mxu0 %v2090_v20  ;;  %v1653_v20 = vld [vmem:[%s2506_s2 + $0x5] ss:$8 sm:$0x3] }
 0x41c   :  { %2093 = vmatprep.subr.bf16.mxu0 %v2092_v21  ;;  %v961_v21 = vrot.slane %v1653_v20, %v2391_v4  ;;  %v965_v22 = vrot.slane %v1653_v20, %v2396_v8  ;;  %v1462_v20 = vld [vmem:[#allocation6 + $0x248] sm:$0xff] }
 0x41f   :  { %2095 = vmatpush1.bf16.msra.mxu0 %v2094_v26 }
 0x420   :  { %2097 = vmatprep.subr.bf16.mxu0 %v2096_v27 }
 0x423   :  { %2099 = vmatpush1.bf16.msra.mxu0 %v2098_v32  ;;  %v1223_v32 = vld [vmem:[#allocation6 + $0x200] sm:$0xff] }
 0x424   :  { %2101 = vmatprep.subr.bf16.mxu0 %v2100_v33  ;;  %v1224_v33 = vld [vmem:[#allocation6 + $0x208] sm:$0xff] }
 0x427   :  { %2103 = vmatpush1.bf16.msra.mxu0 %v2102_v40  ;;  %v1225_v40 = vld [vmem:[#allocation6 + $0x210] sm:$0xff] }
 0x428   :  { %2105 = vmatprep.subr.bf16.mxu0 %v2104_v43  ;;  %v2136_v42 = vpack.c.bf16 %v1226_v41, %v1225_v40  ;;  %v1209_v43 = vld [vmem:[#allocation6 + $0x190] sm:$0xff] }
 0x429   :  { %v2138_v45 = vpack.c.bf16 %v1210_v44, %v1209_v43  ;;  %v1468_v43 = vld [vmem:[#allocation6 + $0x278] sm:$0xff]  ;;  %v1485_v44 = vld [vmem:[#allocation6 + $0x300] sm:$0xff] }
 0x42b   :  { %2107 = vmatpush1.bf16.msra.mxu0 %v2106_v50  ;;  %v1654_v50 = vld [vmem:[%s2506_s2 + $0x6] ss:$8 sm:$0x3] }
 0x42c   :  { %2140 = vmatprep.subr.bf16.mxu0 %v2295_v56 }
 0x4a3   :  { %v884_v34 = vpop.f32.mrb[8].mxu1 }
 0x4a4   :  { %v886_v35 = vpop.f32.mrb[9].mxu1  ;;  %v2439_v37 = vmul.f32 %v884_v34, %v621_v52  ;;  %v1195_v52 = vld [vmem:[#allocation6 + $0x120] sm:$0xff]  ;;  %v2132_v34 = vpack.c.bf16 %v1224_v33, %v1223_v32 }
 0x4a5   :  { %v2435_v36 = vmul.f32 %v886_v35, %v622_v51  ;;  %v1212_v51 = vld [vmem:[#allocation6 + $0x1a8] sm:$0xff]  ;;  %v2110_v54 = vpack.c.bf16 %v1196_v47, %v1195_v52  ;;  %v1207_v35 = vld [vmem:[#allocation6 + $0x180] sm:$0xff] }
 0x4a6   :  { %v2108_v46 = vpack.c.bf16 %v1212_v51, %v1211_v49  ;;  %v2134_v39 = vpack.c.bf16 %v1208_v38, %v1207_v35  ;;  %v1111_v49 = vrot.slane %v1654_v50, %v2391_v4  ;;  %v1115_v51 = vrot.slane %v1654_v50, %v2396_v8  ;;  %v1299_v4 = vld [vmem:[#allocation6 + $0x220] sm:$0xff]  ;;  %v1300_v8 = vld [vmem:[#allocation6 + $0x228] sm:$0xff]  ;;  %v1483_v38 = vld [vmem:[#allocation6 + $0x2f0] sm:$0xff] }
 0x4a7   :  { %1032 = vmatprep.mubr.f32.mxu1 %v2435_v36  ;;  %v2141_v60 = vpack.c.bf16 %v1300_v8, %v1299_v4  ;;  %v1466_v35 = vld [vmem:[#allocation6 + $0x268] sm:$0xff]  ;;  %v1472_v4 = vld [vmem:[#allocation6 + $0x298] sm:$0xff]  ;;  %v1489_v8 = vld [vmem:[#allocation6 + $0x320] sm:$0xff] }
 0x4a8   :  { %1033 = vmatmul.mubr.f32.vlgmr.msra.gmra.mrb[10].mxu1 %v2439_v37  ;;  %2109 = vmatprep.subr.bf16.mxu1 %v2108_v46 }
 0x4a9   :  { %2111 = vmatpush3.bf16.msra.mxu1 %v2110_v54 }
 0x4aa   :  { %2113 = vmatprep.subr.bf16.mxu1 %v2112_v55 }
 0x4ad   :  { %2115 = vmatpush3.bf16.msra.mxu1 %v2114_v61  ;;  %v1302_v61 = vld [vmem:[#allocation6 + $0x238] sm:$0xff] }
 0x4ae   :  { %2117 = vmatprep.subr.bf16.mxu1 %v2116_v62 }
 0x4b1   :  { %2119 = vmatpush3.bf16.msra.mxu1 %v2118_v5 }
 0x4b2   :  { %2121 = vmatprep.subr.bf16.mxu1 %v2120_v7  ;;  %v1382_v7 = vld [vmem:[#allocation4 + $0x628] sm:$0xff] }
 0x4b5   :  { %2123 = vmatpush3.bf16.msra.mxu1 %v2122_v13  ;;  %v1477_v13 = vld [vmem:[#allocation6 + $0x2c0] sm:$0xff] }
 0x4b6   :  { %2125 = vmatprep.subr.bf16.mxu1 %v2124_v14  ;;  %v1478_v14 = vld [vmem:[#allocation6 + $0x2c8] sm:$0xff] }
 0x4b7   :  { %v2150_v19 = vpack.c.bf16 %v1478_v14, %v1477_v13  ;;  %v1493_v14 = vld [vmem:[%s2506_s2 + $0x11] ss:$0 sm:$0xff] }
 0x4b9   :  { %2127 = vmatpush3.bf16.msra.mxu1 %v2126_v17 }
 0x4ba   :  { %2129 = vmatprep.subr.bf16.mxu1 %v2128_v18  ;;  %v1461_v18 = vld [vmem:[#allocation6 + $0x240] sm:$0xff] }
 0x4bd   :  { %2131 = vmatpush3.bf16.msra.mxu1 %v2130_v31  ;;  %v1482_v31 = vld [vmem:[#allocation6 + $0x2e8] sm:$0xff] }
 0x4be   :  { %2133 = vmatprep.subr.bf16.mxu1 %v2132_v34  ;;  %v2158_v33 = vpack.c.bf16 %v1482_v31, %v1481_v30  ;;  %v1465_v34 = vld [vmem:[#allocation6 + $0x260] sm:$0xff]  ;;  %v1564_v30 = vld [vmem:[%s2506_s2 + $0x12] ss:$0 sm:$0xff] }
 0x4bf   :  { %v2160_v40 = vpack.c.bf16 %v1466_v35, %v1465_v34 }
 0x4c1   :  { %2135 = vmatpush3.bf16.msra.mxu1 %v2134_v39  ;;  %v1484_v39 = vld [vmem:[#allocation6 + $0x2f8] sm:$0xff] }
 0x4c2   :  { %2137 = vmatprep.subr.bf16.mxu1 %v2136_v42  ;;  %v2162_v41 = vpack.c.bf16 %v1484_v39, %v1483_v38  ;;  %v1467_v42 = vld [vmem:[#allocation6 + $0x270] sm:$0xff] }
 0x4c3   :  { %v2164_v50 = vpack.c.bf16 %v1468_v43, %v1467_v42 }
 0x4c5   :  { %2139 = vmatpush3.bf16.msra.mxu1 %v2138_v45  ;;  %v1486_v45 = vld [vmem:[#allocation6 + $0x308] sm:$0xff] }
 0x57b   :  { %v1034_v23 = vpop.f32.mrb[10].mxu1 }
 0x57c   :  { %v1035_v24 = vadd.f32 %v1034_v23, %v961_v21  ;;  %v1036_v25 = vpop.f32.mrb[11].mxu1  ;;  %v1480_v23 = vld [vmem:[#allocation6 + $0x2d8] sm:$0xff] }
 0x57d   :  { %v1037_v26 = vadd.f32 %v1036_v25, %v965_v22  ;;  %v1479_v22 = vld [vmem:[#allocation6 + $0x2d0] sm:$0xff]  ;;  %v2152_v25 = vpack.c.bf16 %v1462_v20, %v1461_v18 }
 0x57e   :  { %v1039_v28 = vmax.f32 %v1035_v24, 0.0 }
 0x57f   :  { %v1040_v27 = vmax.f32 %v1037_v26, 0.0 }
 0x581   :  { %1182 = vmatprep.mubr.f32.mxu0 %v1040_v27  ;;  %v2154_v27 = vpack.c.bf16 %v1480_v23, %v1479_v22 }
 0x582   :  { %1183 = vmatmul.mubr.f32.vlgmr.msra.gmra.mrb[4].mxu0 %v1039_v28  ;;  %v1463_v28 = vld [vmem:[#allocation6 + $0x250] sm:$0xff] }
 0x583   :  { %1791 = vmatprep.mubr.msk.f32.mxu0 %vm2296_vm2, %v2294_v0  ;;  %2142 = vmatpush3.bf16.msra.mxu0 %v2141_v60  ;;  %v2156_v32 = vpack.c.bf16 %v1464_v29, %v1463_v28  ;;  %v1490_v60 = vld [vmem:[#allocation6 + $0x328] sm:$0xff] }
 0x584   :  { %2143 = vmatprep.subr.bf16.mxu0 %v2295_v56  ;;  %v2146_v56 = vpack.c.bf16 %v1384_v9, %v1382_v7  ;;  %v1476_v7 = vld [vmem:[#allocation6 + $0x2b8] sm:$0xff] }
 0x655   :  { %v1184_v52 = vpop.f32.mrb[4].mxu0 }
 0x656   :  { %v1185_v46 = vadd.f32 %v1184_v52, %v1111_v49  ;;  %v1186_v47 = vpop.f32.mrb[5].mxu0  ;;  %v2166_v49 = vpack.c.bf16 %v1486_v45, %v1485_v44  ;;  %v1470_v52 = vld [vmem:[#allocation6 + $0x288] sm:$0xff] }
 0x657   :  { %v1187_v48 = vadd.f32 %v1186_v47, %v1115_v51  ;;  %v1469_v51 = vld [vmem:[#allocation6 + $0x280] sm:$0xff]  ;;  %v1488_v47 = vld [vmem:[#allocation6 + $0x318] sm:$0xff] }
 0x658   :  { %v1189_v53 = vmax.f32 %v1185_v46, 0.0  ;;  %v1487_v46 = vld [vmem:[#allocation6 + $0x310] sm:$0xff] }
 0x659   :  { %v1190_v54 = vmax.f32 %v1187_v48, 0.0  ;;  %v2168_v48 = vpack.c.bf16 %v1470_v52, %v1469_v51 }
 0x65a   :  { %v2457_v55 = vadd.f32 %v1189_v53, %v2439_v37  ;;  %v1301_v37 = vld [vmem:[#allocation6 + $0x230] sm:$0xff]  ;;  %v2170_v53 = vpack.c.bf16 %v1488_v47, %v1487_v46 }
 0x65b   :  { %v2460_v57 = vadd.f32 %v1190_v54, %v2435_v36  ;;  %v2144_v36 = vpack.c.bf16 %v1302_v61, %v1301_v37  ;;  %v1471_v54 = vld [vmem:[#allocation6 + $0x290] sm:$0xff]  ;;  %v2174_v61 = vpack.c.bf16 %v1490_v60, %v1489_v8 }
 0x65c   :  { %v1193_v59 = vmax.f32 %v2457_v55, 0.0  ;;  %v2172_v37 = vpack.c.bf16 %v1472_v4, %v1471_v54 }
 0x65d   :  { %v1194_v58 = vmax.f32 %v2460_v57, 0.0  ;;  %2145 = vmatpush3.bf16.msra.mxu0 %v2144_v36  ;;  %v1473_v36 = vld [vmem:[#allocation6 + $0x2a0] sm:$0xff] }
 0x65e   :  { %2147 = vmatprep.subr.bf16.mxu0 %v2146_v56 }
 0x65f   :  { %1292 = vmatprep.mubr.f32.mxu1 %v1194_v58 }
 0x660   :  { %1293 = vmatmul.mubr.f32.vlgmr.msra.gmra.mrb[12].mxu1 %v1193_v59 }
 0x733   :  { %v1729_v62 = vpop.f32.mrb[12].mxu1 }
 0x734   :  { %v1730_v1 = vpop.f32.mrb[13].mxu1 }
 0x735   :  { %v1731_v2 = vadd.f32 %v1730_v1, %v1729_v62  ;;  %v1474_v62 = vld [vmem:[#allocation6 + $0x2a8] sm:$0xff]  ;;  %v1491_v1 = vld [vmem:[#allocation6 + $0x330] sm:$0xff] }
 0x737   :  { %v1295_v3 = vadd.f32 %v1731_v2, %v1227_v63  ;;  %v2176_v63 = vpack.c.bf16 %v1474_v62, %v1473_v36  ;;  %v1492_v2 = vld [vmem:[#allocation6 + $0x338] sm:$0xff] }
 0x739   :  { %v1298_v5 = vmax.f32 %v1295_v3, 0.0  ;;  %v2178_v3 = vpack.c.bf16 %v1492_v2, %v1491_v1 }
 0x73b   :  { %1792 = vmatmul.mubr.msk.f32.vlgmr.msra.gmra.mrb[6].mxu0 %vm732_vm3, %v1298_v5  ;;  %v1475_v5 = vld [vmem:[#allocation6 + $0x2b0] sm:$0xff] }
 0x73c   :  { %1452 = vmatprep.mubr.f32.mxu0 %v2294_v0  ;;  %2149 = vmatpush1.bf16.msra.mxu0 %v2148_v12  ;;  %v2180_v9 = vpack.c.bf16 %v1476_v7, %v1475_v5 }
 0x73d   :  { %2151 = vmatprep.subr.bf16.mxu0 %v2150_v19 }
 0x80e   :  { %v1373_v16 = vpop.f32.mrb[6].mxu0 }
 0x80f   :  { %v1374_v6 = vadd.f32 %v1373_v16, %v1303_v15  ;;  %v1793_v17 = vpop.f32.mrb[7].mxu0 }
 0x811   :  { %v1377_v0 = vmul.f32 0.5, %v1374_v6 }
 0x813   :  { %2201 = vtanh.f32 %v1377_v0 }
 0x81d   :  { %v2202_v21 = vpop.eup %2201 }
 0x81e   :  { %v1379_v24 = vmul.f32 0.5, %v2202_v21 }
 0x820   :  { %v1380_v26 = vadd.f32 0.5, %v1379_v24 }
 0x822   :  { %1656 = vmatmul.mubr.msk.f32.vlgmr.msra.gmra.mrb[8].mxu0 %vm814_vm4, %v1380_v26 }
 0x823   :  { %2153 = vmatpush3.bf16.msra.mxu0 %v2152_v25 }
 0x824   :  { %2155 = vmatprep.subr.bf16.mxu0 %v2154_v27 }
 0x827   :  { %2157 = vmatpush3.bf16.msra.mxu0 %v2156_v32  ;;  %v1565_v32 = vld [vmem:[%s2506_s2 + $0x13] ss:$0 sm:$0xff] }
 0x828   :  { %2159 = vmatprep.subr.bf16.mxu0 %v2158_v33 }
 0x82b   :  { %2161 = vmatpush3.bf16.msra.mxu0 %v2160_v40 }
 0x82c   :  { %2163 = vmatprep.subr.bf16.mxu0 %v2162_v41 }
 0x82f   :  { %2165 = vmatpush3.bf16.msra.mxu0 %v2164_v50 }
 0x830   :  { %2167 = vmatprep.subr.bf16.mxu0 %v2166_v49 }
 0x833   :  { %2169 = vmatpush3.bf16.msra.mxu0 %v2168_v48 }
 0x834   :  { %2171 = vmatprep.subr.bf16.mxu0 %v2170_v53 }
 0x837   :  { %2173 = vmatpush3.bf16.msra.mxu0 %v2172_v37 }
 0x838   :  { %2175 = vmatprep.subr.bf16.mxu0 %v2174_v61 }
 0x83b   :  { %2177 = vmatpush3.bf16.msra.mxu0 %v2176_v63 }
 0x83c   :  { %2179 = vmatprep.subr.bf16.mxu0 %v2178_v3 }
 0x83f   :  { %2181 = vmatpush3.bf16.msra.mxu0 %v2180_v9 }
 0x8f5   :  { %v1454_v56 = vpop.f32.mrb[8].mxu0 }
 0x8f6   :  { %v1456_v10 = vpop.f32.mrb[9].mxu0  ;;  %v1459_v12 = vmul.f32 %v1454_v56, %v1193_v59 }
 0x8f7   :  { %v1460_v11 = vmul.f32 %v1456_v10, %v1194_v58 }
 0x8f9   :  { %1558 = vmatprep.mubr.f32.mxu0 %v1460_v11 }
 0x8fa   :  { %1559 = vmatmul.mubr.f32.vlgmr.msra.gmra.mrb[10].mxu0 %v1459_v12 }
 0x9cd   :  { %v1769_v13 = vpop.f32.mrb[10].mxu0 }
 0x9ce   :  { %v1770_v19 = vpop.f32.mrb[11].mxu0 }
 0x9cf   :  { %v1771_v15 = vadd.f32 %v1770_v19, %v1769_v13 }
 0x9d1   :  { %v1561_v16 = vadd.f32 %v1771_v15, %v1493_v14 }
 0x9d3   :  { %1595 = vrot.lane.b32.xlu0 %v1561_v16, %s2297_s9  ;;  %v1567_v0 = vsel %vm1566_vm6, %v1561_v16, 0.0 }
 0xa45   :  { %v1596_v6 = vpop.permute.xlu0 %1595 }
 0xa46   :  { %v1599_v57 = vsel %vm1598_vm5, %v1596_v6, 0.0 }
 0xa47   :  { %1600 = vadd.xlane.f32.xlu0 %v1599_v57 }
 0xad4   :  { %v1601_v55 = vpop.xlane.xlu0 %1600 }
 0xad5   :  { %v1603_v58 = vmul.f32 0.14285715, %v1601_v55 }
 0xad7   :  { %v1604_v59 = vsub.f32 %v1561_v16, %v1603_v58 }
 0xad9   :  { %v1605_v17 = vmul.f32 %v1604_v59, %v1604_v59 }
 0xadb   :  { %1607 = vrot.lane.b32.xlu1 %v1605_v17, %s2297_s9 }
 0xaff   :  { %1568 = vadd.xlane.f32.xlu1 %v1567_v0 }
 0xb4d   :  { %v1608_v18 = vpop.permute.xlu1 %1607 }
 0xb4e   :  { %v1610_v20 = vsel %vm1598_vm5, %v1608_v18, 0.0 }
 0xb4f   :  { %1611 = vadd.xlane.f32.xlu0 %v1610_v20 }
 0xb8c   :  { %v1569_v21 = vpop.xlane.xlu1 %1568 }
 0xb8d   :  { %v1571_v22 = vmul.f32 0.25, %v1569_v21 }
 0xb8f   :  { %v1572_v23 = vsub.f32 %v1561_v16, %v1571_v22 }
 0xb91   :  { %v1573_v24 = vmul.f32 %v1572_v23, %v1572_v23 }
 0xb93   :  { %v1574_v25 = vsel %vm1566_vm6, %v1573_v24, 0.0 }
 0xb94   :  { %1575 = vadd.xlane.f32.xlu0 %v1574_v25 }
 0xbdc   :  { %v1612_v26 = vpop.xlane.xlu0 %1611 }
 0xbdd   :  { %v1613_v27 = vmul.f32 0.14285715, %v1612_v26 }
 0xbdf   :  { %v1614_v28 = vadd.f32 1e-05, %v1613_v27 }
 0xbe1   :  { %2203 = vrsqrt.f32 %v1614_v28 }
 0xbeb   :  { %v2204_v29 = vpop.eup %2203 }
 0xbec   :  { %v1616_v31 = vmul.f32 %v2204_v29, %v1604_v59 }
 0xbee   :  { %v1617_v33 = vmul.f32 %v1616_v31, %v1564_v30 }
 0xbf0   :  { %v1618_v34 = vadd.f32 %v1617_v33, %v1565_v32 }
 0xbf2   :  { %v1620_v35 = vsel %vm1619_vm7, %v1618_v34, -inf }
 0xbf3   :  { %1621 = vmax.xlane.f32.xlu1 %v1620_v35 }
 0xc21   :  { %v1576_v38 = vpop.xlane.xlu0 %1575 }
 0xc22   :  { %v1577_v39 = vmul.f32 0.25, %v1576_v38 }
 0xc24   :  { %v1578_v40 = vadd.f32 1e-05, %v1577_v39 }
 0xc26   :  { %2205 = vrsqrt.f32 %v1578_v40 }
 0xc30   :  { %v2206_v41 = vpop.eup %2205 }
 0xc31   :  { %v1580_v42 = vmul.f32 %v2206_v41, %v1572_v23 }
 0xc33   :  { %v1581_v43 = vmul.f32 %v1580_v42, %v1564_v30 }
 0xc35   :  { %v1582_v44 = vadd.f32 %v1581_v43, %v1565_v32 }
 0xc37   :  { %v1583_v45 = vsel %vm1566_vm6, %v1582_v44, -inf }
 0xc38   :  { %1584 = vmax.xlane.f32.xlu0 %v1583_v45 }
 0xc80   :  { %v1622_v50 = vpop.xlane.xlu1 %1621 }
 0xc81   :  { %v1623_v49 = vsub.f32 %v1618_v34, %v1622_v50 }
 0xc83   :  { %v1624_v51 = vmul.f32 1.442695, %v1623_v49 }
 0xc85   :  { %2207 = vpow2.f32 %v1624_v51 }
 0xc8f   :  { %v2208_v52 = vpop.eup %2207 }
 0xc90   :  { %1627 = vrot.lane.b32.xlu1 %v2208_v52, %s2297_s9 }
 0xcc5   :  { %v1585_v46 = vpop.xlane.xlu0 %1584 }
 0xcc6   :  { %v1586_v47 = vsub.f32 %v1582_v44, %v1585_v46 }
 0xcc8   :  { %v1587_v48 = vmul.f32 1.442695, %v1586_v47 }
 0xcca   :  { %2209 = vpow2.f32 %v1587_v48 }
 0xcd4   :  { %v2210_v53 = vpop.eup %2209 }
 0xcd5   :  { %v1589_v54 = vsel %vm1566_vm6, %v2210_v53, 0.0 }
 0xcd6   :  { %1590 = vadd.xlane.f32.xlu0 %v1589_v54 }
 0xd02   :  { %v1628_v4 = vpop.permute.xlu1 %1627 }
 0xd03   :  { %v1630_v8 = vsel %vm1598_vm5, %v1628_v4, 0.0 }
 0xd04   :  { %1631 = vadd.xlane.f32.xlu0 %v1630_v8 }
 0xd63   :  { %v1591_v60 = vpop.xlane.xlu0 %1590 }
 0xd64   :  { %2211 = vrcp.f32 %v1591_v60 }
 0xd6e   :  { %v2212_v61 = vpop.eup %2211 }
 0xd6f   :  { %v1593_v62 = vmul.f32 %v2212_v61, %v2210_v53 }
 0xd91   :  { %v1632_v37 = vpop.xlane.xlu0 %1631 }
 0xd92   :  { %2213 = vrcp.f32 %v1632_v37 }
 0xd9c   :  { %v2214_v36 = vpop.eup %2213 }
 0xd9d   :  { %v1634_v63 = vmul.f32 %v2214_v36, %v2208_v52 }
 0xd9f   :  { %v1636_v1 = vsel %vm1635_vm8, %v1593_v62, %v1634_v63 }
 0xda0   :  { %1638 = vst.msk [vmem:[%s2510_s6] sm:$0x3] %vm1637_vm9, %v1636_v1 }
 0xda1   :  { %1643 = vsyncpa [#allocation3], 1 }
 0xda2   :  { %1644 = vsyncpa [#allocation5], 1 }

</bundles_post_ra>
